<compile_context>
chip_gen: v5e
topology: v5e:2x2
jax: 0.10.0
libtpu: 0.0.40
codegen_flags: <defaults>
</compile_context>

<pallas_src>
import functools
import math

import jax
import jax.numpy as jnp
from jax.experimental import pallas as pl
from jax.experimental.pallas import tpu as pltpu


# ---------------------------------------------------------------------------
# Pallas kernel: hoisted x-projection + fused bi-directional recurrence + FC.
# ---------------------------------------------------------------------------
def bilstm_fc_kernel(
    merged,       # static python bool: merged block-diag recurrence (v6e/v7x)
    x_ref,        # (S*Bp, D)  bf16  time-major rows: row t*Bp + b = x[b, t, :]
    wih_ref,      # (D, 8H)    bf16  [fwd i|f|g|o | bwd i|f|g|o], g cols *2
    whh_ref,      # (2H, 8H)   bf16  block-diag: [:H,:4H]=fwd, [H:,4H:]=bwd
    b_ref,        # (1, 8H)    f32   (b_ih + b_hh) both dirs, g entries *2
    wfc_ref,      # (1, 2H)    f32   fc weight [fwd half | bwd half]
    bfc_ref,      # (1, 1)     f32   fc bias
    out_ref,      # (Bp, S)    f32   lane-dense output slab
    xproj_scr,    # (S*Bp, 8H) f32   scratch: hoisted input projection
):
    H = whh_ref.shape[0] // 2
    G = 4 * H
    Bp, S = out_ref.shape

    # ---- hoisted input projection: one MXU op covers both directions -------
    xproj_scr[...] = (
        jnp.dot(x_ref[...], wih_ref[...], preferred_element_type=jnp.float32)
        + b_ref[...]
    )

    wfc = wfc_ref[...]                                  # (1, 2H) [fwd | bwd]

    # Stream FC results into the output slab; start from the FC bias so every
    # column only needs one fwd add and one bwd add.
    out_ref[...] = jnp.broadcast_to(bfc_ref[...], (Bp, S))

    def emit(t, tt, col_f, col_b):
        # Per-step single-lane RMW stores use otherwise-idle vld/vst slots and
        # keep no per-column values live across the unrolled recurrence.
        out_ref[:, t:t + 1] = out_ref[:, t:t + 1] + col_f
        out_ref[:, tt:tt + 1] = out_ref[:, tt:tt + 1] + col_b

    if merged:
        # v6e/v7x: one block-diagonal (2H, 8H) recurrent matmul per step fills
        # the 256-wide MXU; one sigmoid over the merged (Bp, 8H) gate slab and
        # one tanh over (Bp, 2H) halve the EUP pushes on the serial chain.
        # Keep `xg + dot(...)` adjacent so the v7x MRB can accumulate in place.
        whh = whh_ref[...]
        h = jnp.zeros((Bp, 2 * H), jnp.float32)         # [h_f | h_b]
        c = jnp.zeros((Bp, 2 * H), jnp.float32)
        for t in range(S):
            tt = S - 1 - t
            xg = jnp.concatenate(
                [xproj_scr[t * Bp:(t + 1) * Bp, :G],
                 xproj_scr[tt * Bp:(tt + 1) * Bp, G:]], axis=1)     # (Bp, 8H)
            gates = xg + jnp.dot(h.astype(jnp.bfloat16), whh,
                                 preferred_element_type=jnp.float32)
            # g-gate lanes were pre-scaled by 2: tanh(a) = 2*sigmoid(2a) - 1,
            # so a single sigmoid covers all eight gate blocks.
            s = jax.nn.sigmoid(gates)
            i = jnp.concatenate([s[:, 0:H], s[:, G:G + H]], axis=1)
            f = jnp.concatenate([s[:, H:2 * H], s[:, G + H:G + 2 * H]], axis=1)
            g = 2.0 * jnp.concatenate([s[:, 2 * H:3 * H],
                                       s[:, G + 2 * H:G + 3 * H]], axis=1) - 1.0
            o = jnp.concatenate([s[:, 3 * H:4 * H],
                                 s[:, G + 3 * H:G + 4 * H]], axis=1)
            c = f * c + i * g
            h = o * jnp.tanh(c)                 # one EUP push for both dirs
            contrib = h * wfc                   # FC folded: VPU mul + reduce
            emit(t, tt,
                 jnp.sum(contrib[:, :H], axis=-1, keepdims=True),
                 jnp.sum(contrib[:, H:], axis=-1, keepdims=True))
    else:
        # v5e: per-direction N=128 already fills its 128-wide MXU; keep two
        # interleaved chains so each direction's gate math hides under the
        # other direction's matmul latency.
        whh_f = whh_ref[0:H, 0:G]
        whh_b = whh_ref[H:2 * H, G:2 * G]
        wfc_f = wfc[:, :H]
        wfc_b = wfc[:, H:]

        def half_step(h, c, xg, whh):
            gates = xg + jnp.dot(h.astype(jnp.bfloat16), whh,
                                 preferred_element_type=jnp.float32)
            s = jax.nn.sigmoid(gates)           # one full-vreg EUP push
            i = s[:, 0:H]
            f = s[:, H:2 * H]
            g = 2.0 * s[:, 2 * H:3 * H] - 1.0
            o = s[:, 3 * H:4 * H]
            c_new = f * c + i * g
            return o * jnp.tanh(c_new), c_new

        zeros = jnp.zeros((Bp, H), jnp.float32)
        h_f, c_f, h_b, c_b = zeros, zeros, zeros, zeros
        for t in range(S):
            tt = S - 1 - t
            xg_f = xproj_scr[t * Bp:(t + 1) * Bp, :G]
            xg_b = xproj_scr[tt * Bp:(tt + 1) * Bp, G:]
            h_f, c_f = half_step(h_f, c_f, xg_f, whh_f)
            h_b, c_b = half_step(h_b, c_b, xg_b, whh_b)
            emit(t, tt,
                 jnp.sum(h_f * wfc_f, axis=-1, keepdims=True),
                 jnp.sum(h_b * wfc_b, axis=-1, keepdims=True))


# ---------------------------------------------------------------------------
# One-time parameter re-layout (cache the result; do NOT call per forward).
# ---------------------------------------------------------------------------
def prepare_params(params):
    """Re-layout PyTorch-style LSTM/Linear params for the kernel.

    NOTE: the x2 prescale on the g-gate columns of W_ih, W_hh and the combined
    bias is coupled to the kernel's `2*sigmoid(2a)-1` tanh trick -- parameters
    must always go through this function before reaching the kernel.
    """
    (w_ih_f, w_hh_f, b_ih_f, b_hh_f,
     w_ih_b, w_hh_b, b_ih_b, b_hh_b, fc_w, fc_b) = params
    H = w_hh_f.shape[1]

    def prescale_g(w):
        return w.at[..., 2 * H:3 * H].multiply(2.0)

    wih_cat = jnp.concatenate(
        [prescale_g(w_ih_f.T), prescale_g(w_ih_b.T)], axis=1
    ).astype(jnp.bfloat16)                                        # (D, 8H)

    whh_bd = jnp.zeros((2 * H, 8 * H), jnp.float32)
    whh_bd = whh_bd.at[:H, :4 * H].set(prescale_g(w_hh_f.T))
    whh_bd = whh_bd.at[H:, 4 * H:].set(prescale_g(w_hh_b.T))
    whh_bd = whh_bd.astype(jnp.bfloat16)                          # (2H, 8H)

    b_cat = jnp.concatenate(
        [prescale_g((b_ih_f + b_hh_f)[None, :]),
         prescale_g((b_ih_b + b_hh_b)[None, :])], axis=1)         # (1, 8H)

    wfc_cat = fc_w                                                # (1, 2H)
    bfc = fc_b.reshape(1, 1)                                      # (1, 1)
    return (wih_cat, whh_bd, b_cat, wfc_cat, bfc)


def _prefers_merged_recurrence() -> bool:
    try:
        kind = jax.devices()[0].device_kind.lower()
    except Exception:
        return True
    # v5e ("v5 lite"): per-direction N=128 already fills its 128-wide MXU.
    return not ("v5e" in kind or "v5 lite" in kind or "v5lite" in kind)


# ---------------------------------------------------------------------------
# Forward: x relayout (fusible into the pallas_call) + kernel launch.
# ---------------------------------------------------------------------------
@jax.jit
def custom_lstm_forward(x, prepped):
    """CustomLSTM forward. Dropout(0.2) is an identity at inference (omitted)."""
    wih_cat, whh_bd, b_cat, wfc_cat, bfc = prepped
    B, S, D = x.shape
    H = whh_bd.shape[0] // 2

    # pad batch (sublane dim) up to a multiple of 8 -> full (8,128) vregs.
    # TODO(synk): for real serving workloads, batch sequences so Bp grows
    #             toward 128/256 -- extra batch rows ride the MXU for free.
    Bp = max(8, ((B + 7) // 8) * 8)

    # time-major, batch-padded, flattened, bf16 input: row t*Bp + b = x[b,t,:].
    # bf16 halves the x DMA bytes; allow_input_fusion lets XLA fuse this
    # relayout into the pallas_call instead of a separate HBM round trip.
    x_tm = jnp.swapaxes(x, 0, 1)                               # (S, B, D)
    x_tm = jnp.pad(x_tm, ((0, 0), (0, Bp - B), (0, 0)))        # (S, Bp, D)
    x2d = x_tm.reshape(S * Bp, D).astype(jnp.bfloat16)         # (S*Bp, D)

    flops = int(2 * S * Bp * D * 8 * H            # input projection
                + 2 * S * Bp * 2 * H * 8 * H      # recurrence (block-diag)
                + 2 * S * Bp * 2 * H)             # folded FC
    transcendentals = int(S * Bp * 10 * H)        # sigmoid(8H) + tanh(2H)
    bytes_accessed = int(x2d.size * 2 + wih_cat.size * 2 + whh_bd.size * 2
                         + b_cat.size * 4 + wfc_cat.size * 4 + bfc.size * 4
                         + Bp * S * 4)

    vmem = pl.BlockSpec(memory_space=pltpu.MemorySpace.VMEM)
    out = pl.pallas_call(
        functools.partial(bilstm_fc_kernel, _prefers_merged_recurrence()),
        out_shape=jax.ShapeDtypeStruct((Bp, S), jnp.float32),
        in_specs=[vmem] * 6,
        out_specs=vmem,
        # TODO(synk): switch this scratch to bf16 / tile over time if S*Bp*8H
        #             grows (v7x has only 64 MiB VMEM).
        scratch_shapes=[pltpu.VMEM((S * Bp, 8 * H), jnp.float32)],
        compiler_params=pltpu.CompilerParams(
            allow_input_fusion=[True, False, False, False, False, False]),
        cost_estimate=pl.CostEstimate(flops=flops,
                                      transcendentals=transcendentals,
                                      bytes_accessed=bytes_accessed),
    )(x2d, wih_cat, whh_bd, b_cat, wfc_cat, bfc)

    # lane-dense (Bp, S) slab -> (B, S, 1) as nn.Linear(2H, 1) produces
    return out[:B, :, None]


# ---------------------------------------------------------------------------
# Pure-JAX reference (mirrors PyTorch nn.LSTM bidirectional + nn.Linear).
# ---------------------------------------------------------------------------
def reference_forward(x, params):
    (w_ih_f, w_hh_f, b_ih_f, b_hh_f,
     w_ih_b, w_hh_b, b_ih_b, b_hh_b,
     fc_w, fc_b) = params
    H = w_hh_f.shape[1]
    HI = jax.lax.Precision.HIGHEST

    def run(x_seq, wih, whh, b):          # x_seq: (S, B, D)
        h0 = jnp.zeros((x_seq.shape[1], H), jnp.float32)
        c0 = jnp.zeros_like(h0)

        def step(carry, x_t):
            h, c = carry
            g = (jnp.dot(x_t, wih.T, precision=HI)
                 + jnp.dot(h, whh.T, precision=HI) + b)
            i = jax.nn.sigmoid(g[:, :H])
            f = jax.nn.sigmoid(g[:, H:2 * H])
            gg = jnp.tanh(g[:, 2 * H:3 * H])
            o = jax.nn.sigmoid(g[:, 3 * H:])
            c = f * c + i * gg
            h = o * jnp.tanh(c)
            return (h, c), h

        _, hs = jax.lax.scan(step, (h0, c0), x_seq)
        return hs                          # (S, B, H)

    xs = jnp.swapaxes(x, 0, 1)             # (S, B, D)
    hf = run(xs, w_ih_f, w_hh_f, b_ih_f + b_hh_f)
    hb = run(xs[::-1], w_ih_b, w_hh_b, b_ih_b + b_hh_b)[::-1]
    hcat = jnp.concatenate([hf, hb], axis=-1)                    # (S, B, 2H)
    out = jnp.einsum("sbh,oh->bso", hcat, fc_w, precision=HI) + fc_b
    return out                                                   # (B, S, 1)


# ---------------------------------------------------------------------------
if __name__ == "__main__":
    # Small shapes consistent with CustomLSTM(input_dim=D, hidden_dim=H).
    B, S, D, H = 2, 8, 16, 32

    key = jax.random.PRNGKey(0)
    ks = jax.random.split(key, 12)
    k_lstm = 1.0 / math.sqrt(H)
    k_fc = 1.0 / math.sqrt(2 * H)

    def u(k, shape, bound):
        return jax.random.uniform(k, shape, jnp.float32, -bound, bound)

    params = (
        u(ks[0], (4 * H, D), k_lstm),   # weight_ih_l0
        u(ks[1], (4 * H, H), k_lstm),   # weight_hh_l0
        u(ks[2], (4 * H,), k_lstm),     # bias_ih_l0
        u(ks[3], (4 * H,), k_lstm),     # bias_hh_l0
        u(ks[4], (4 * H, D), k_lstm),   # weight_ih_l0_reverse
        u(ks[5], (4 * H, H), k_lstm),   # weight_hh_l0_reverse
        u(ks[6], (4 * H,), k_lstm),     # bias_ih_l0_reverse
        u(ks[7], (4 * H,), k_lstm),     # bias_hh_l0_reverse
        u(ks[8], (1, 2 * H), k_fc),     # fc.weight
        u(ks[9], (1,), k_fc),           # fc.bias
    )

    x = jax.random.normal(ks[10], (B, S, D), jnp.float32)

    # One-time parameter re-layout; cache and reuse across forwards.
    prepped = jax.block_until_ready(prepare_params(params))

    out = jax.block_until_ready(custom_lstm_forward(x, prepped))
    ref = jax.block_until_ready(reference_forward(x, params))

    assert out.shape == (B, S, 1)
    err = float(jnp.max(jnp.abs(out - ref)))
    # bf16 MXU inputs with f32 accumulation / f32 cell state: small numeric
    # deviation from the f32 reference is expected.
    assert jnp.allclose(out, ref, atol=5e-3, rtol=5e-3), f"max abs err = {err}"

    print("KERNEL_OK")
</pallas_src>

<mosaic_0001>
module attributes {stable_mosaic.version = 11 : i64} {
  func.func @bilstm_fc_kernel(%arg0: memref<64x16xbf16, #tpu.memory_space<vmem>>, %arg1: memref<16x256xbf16, #tpu.memory_space<vmem>>, %arg2: memref<64x256xbf16, #tpu.memory_space<vmem>>, %arg3: memref<1x256xf32, #tpu.memory_space<vmem>>, %arg4: memref<1x64xf32, #tpu.memory_space<vmem>>, %arg5: memref<1x1xf32, #tpu.memory_space<vmem>>, %arg6: memref<8x8xf32, #tpu.memory_space<vmem>>, %arg7: memref<64x256xf32, #tpu.memory_space<vmem>>) attributes {dimension_semantics = [], scalar_prefetch = 0 : i64, scratch_operands = 1 : i64, tpu.core_type = #tpu.core_type<tc>} {
    %c0 = arith.constant 0 : index
    %c0_0 = arith.constant 0 : index
    %0 = vector.load %arg0[%c0, %c0_0] : memref<64x16xbf16, #tpu.memory_space<vmem>>, vector<64x16xbf16>
    %c0_1 = arith.constant 0 : index
    %c0_2 = arith.constant 0 : index
    %1 = vector.load %arg1[%c0_1, %c0_2] : memref<16x256xbf16, #tpu.memory_space<vmem>>, vector<16x256xbf16>
    %cst = arith.constant dense<0.000000e+00> : vector<64x256xf32>
    %2 = tpu.matmul %0, %1, %cst {dimension_numbers = #tpu.dot_dimension_numbers<[1], [0], [0], [1], [0, 0, 1, 1], [], []>} : vector<64x16xbf16>, vector<16x256xbf16>, vector<64x256xf32> -> vector<64x256xf32>
    %c0_3 = arith.constant 0 : index
    %c0_4 = arith.constant 0 : index
    %3 = vector.load %arg3[%c0_3, %c0_4] : memref<1x256xf32, #tpu.memory_space<vmem>>, vector<1x256xf32>
    %4 = vector.broadcast %3 : vector<1x256xf32> to vector<64x256xf32>
    %5 = arith.addf %2, %4 : vector<64x256xf32>
    %c0_5 = arith.constant 0 : index
    %c0_6 = arith.constant 0 : index
    %6 = vector.load %arg7[%c0_5, %c0_6] : memref<64x256xf32, #tpu.memory_space<vmem>>, vector<64x256xf32>
    tpu.vector_store %arg7[%c0_5, %c0_6], %5 {strides = array<i32>} : memref<64x256xf32, #tpu.memory_space<vmem>>, vector<64x256xf32>,
    %c0_7 = arith.constant 0 : index
    %c0_8 = arith.constant 0 : index
    %7 = vector.load %arg4[%c0_7, %c0_8] : memref<1x64xf32, #tpu.memory_space<vmem>>, vector<1x64xf32>
    %c0_9 = arith.constant 0 : index
    %c0_10 = arith.constant 0 : index
    %8 = vector.load %arg5[%c0_9, %c0_10] : memref<1x1xf32, #tpu.memory_space<vmem>>, vector<1x1xf32>
    %9 = vector.shape_cast %8 : vector<1x1xf32> to vector<1x1xf32>
    %10 = vector.broadcast %9 : vector<1x1xf32> to vector<8x8xf32>
    %c0_11 = arith.constant 0 : index
    %c0_12 = arith.constant 0 : index
    %11 = vector.load %arg6[%c0_11, %c0_12] : memref<8x8xf32, #tpu.memory_space<vmem>>, vector<8x8xf32>
    tpu.vector_store %arg6[%c0_11, %c0_12], %10 {strides = array<i32>} : memref<8x8xf32, #tpu.memory_space<vmem>>, vector<8x8xf32>,
    %c0_13 = arith.constant 0 : index
    %c0_14 = arith.constant 0 : index
    %12 = vector.load %arg2[%c0_13, %c0_14] : memref<64x256xbf16, #tpu.memory_space<vmem>>, vector<64x256xbf16>
    %cst_15 = arith.constant 0.000000e+00 : f32
    %13 = vector.broadcast %cst_15 : f32 to vector<8x64xf32>
    %cst_16 = arith.constant 0.000000e+00 : f32
    %14 = vector.broadcast %cst_16 : f32 to vector<8x64xf32>
    %c0_17 = arith.constant 0 : index
    %c0_18 = arith.constant 0 : index
    %15 = vector.load %arg7[%c0_17, %c0_18] : memref<64x256xf32, #tpu.memory_space<vmem>>, vector<8x128xf32>
    %c56 = arith.constant 56 : index
    %c128 = arith.constant 128 : index
    %16 = vector.load %arg7[%c56, %c128] : memref<64x256xf32, #tpu.memory_space<vmem>>, vector<8x128xf32>
    %17 = tpu.concatenate %15, %16 in 1 : vector<8x128xf32>, vector<8x128xf32> -> vector<8x256xf32>
    %18 = arith.truncf %13 : vector<8x64xf32> to vector<8x64xbf16>
    %cst_19 = arith.constant dense<0.000000e+00> : vector<8x256xf32>
    %19 = tpu.matmul %18, %12, %cst_19 {dimension_numbers = #tpu.dot_dimension_numbers<[1], [0], [0], [1], [0, 0, 1, 1], [], []>} : vector<8x64xbf16>, vector<64x256xbf16>, vector<8x256xf32> -> vector<8x256xf32>
    %20 = arith.addf %17, %19 : vector<8x256xf32>
    %21 = arith.negf %20 : vector<8x256xf32>
    %22 = math.exp %21 : vector<8x256xf32>
    %cst_20 = arith.constant 1.000000e+00 : f32
    %23 = vector.broadcast %cst_20 : f32 to vector<8x256xf32>
    %24 = arith.addf %23, %22 : vector<8x256xf32>
    %25 = arith.divf %23, %24 : vector<8x256xf32>
    %26 = vector.extract_strided_slice %25 {offsets = [0, 0], sizes = [8, 32], strides = [1, 1]} : vector<8x256xf32> to vector<8x32xf32>
    %27 = vector.extract_strided_slice %25 {offsets = [0, 128], sizes = [8, 32], strides = [1, 1]} : vector<8x256xf32> to vector<8x32xf32>
    %28 = tpu.concatenate %26, %27 in 1 : vector<8x32xf32>, vector<8x32xf32> -> vector<8x64xf32>
    %29 = vector.extract_strided_slice %25 {offsets = [0, 32], sizes = [8, 32], strides = [1, 1]} : vector<8x256xf32> to vector<8x32xf32>
    %30 = vector.extract_strided_slice %25 {offsets = [0, 160], sizes = [8, 32], strides = [1, 1]} : vector<8x256xf32> to vector<8x32xf32>
    %31 = tpu.concatenate %29, %30 in 1 : vector<8x32xf32>, vector<8x32xf32> -> vector<8x64xf32>
    %32 = vector.extract_strided_slice %25 {offsets = [0, 64], sizes = [8, 32], strides = [1, 1]} : vector<8x256xf32> to vector<8x32xf32>
    %33 = vector.extract_strided_slice %25 {offsets = [0, 192], sizes = [8, 32], strides = [1, 1]} : vector<8x256xf32> to vector<8x32xf32>
    %34 = tpu.concatenate %32, %33 in 1 : vector<8x32xf32>, vector<8x32xf32> -> vector<8x64xf32>
    %cst_21 = arith.constant 2.000000e+00 : f32
    %35 = vector.broadcast %cst_21 : f32 to vector<8x64xf32>
    %36 = arith.mulf %35, %34 : vector<8x64xf32>
    %cst_22 = arith.constant 1.000000e+00 : f32
    %37 = vector.broadcast %cst_22 : f32 to vector<8x64xf32>
    %38 = arith.subf %36, %37 : vector<8x64xf32>
    %39 = vector.extract_strided_slice %25 {offsets = [0, 96], sizes = [8, 32], strides = [1, 1]} : vector<8x256xf32> to vector<8x32xf32>
    %40 = vector.extract_strided_slice %25 {offsets = [0, 224], sizes = [8, 32], strides = [1, 1]} : vector<8x256xf32> to vector<8x32xf32>
    %41 = tpu.concatenate %39, %40 in 1 : vector<8x32xf32>, vector<8x32xf32> -> vector<8x64xf32>
    %42 = arith.mulf %31, %14 : vector<8x64xf32>
    %43 = arith.mulf %28, %38 : vector<8x64xf32>
    %44 = arith.addf %42, %43 : vector<8x64xf32>
    %45 = math.tanh %44 : vector<8x64xf32>
    %46 = arith.mulf %41, %45 : vector<8x64xf32>
    %47 = vector.broadcast %7 : vector<1x64xf32> to vector<8x64xf32>
    %48 = arith.mulf %46, %47 : vector<8x64xf32>
    %49 = vector.extract_strided_slice %48 {offsets = [0, 0], sizes = [8, 32], strides = [1, 1]} : vector<8x64xf32> to vector<8x32xf32>
    %cst_23 = arith.constant dense<0.000000e+00> : vector<8xf32>
    %50 = vector.multi_reduction <add>, %49, %cst_23 [1] : vector<8x32xf32> to vector<8xf32>
    %51 = vector.shape_cast %50 : vector<8xf32> to vector<8x1xf32>
    %52 = vector.extract_strided_slice %48 {offsets = [0, 32], sizes = [8, 32], strides = [1, 1]} : vector<8x64xf32> to vector<8x32xf32>
    %cst_24 = arith.constant dense<0.000000e+00> : vector<8xf32>
    %53 = vector.multi_reduction <add>, %52, %cst_24 [1] : vector<8x32xf32> to vector<8xf32>
    %54 = vector.shape_cast %53 : vector<8xf32> to vector<8x1xf32>
    %c0_25 = arith.constant 0 : index
    %c0_26 = arith.constant 0 : index
    %55 = vector.load %arg6[%c0_25, %c0_26] : memref<8x8xf32, #tpu.memory_space<vmem>>, vector<8x1xf32>
    %56 = arith.addf %55, %51 : vector<8x1xf32>
    %c0_27 = arith.constant 0 : index
    %c0_28 = arith.constant 0 : index
    %57 = vector.load %arg6[%c0_27, %c0_28] : memref<8x8xf32, #tpu.memory_space<vmem>>, vector<8x1xf32>
    tpu.vector_store %arg6[%c0_27, %c0_28], %56 {strides = array<i32>} : memref<8x8xf32, #tpu.memory_space<vmem>>, vector<8x1xf32>,
    %c0_29 = arith.constant 0 : index
    %c7 = arith.constant 7 : index
    %58 = vector.load %arg6[%c0_29, %c7] : memref<8x8xf32, #tpu.memory_space<vmem>>, vector<8x1xf32>
    %59 = arith.addf %58, %54 : vector<8x1xf32>
    %c0_30 = arith.constant 0 : index
    %c7_31 = arith.constant 7 : index
    %60 = vector.load %arg6[%c0_30, %c7_31] : memref<8x8xf32, #tpu.memory_space<vmem>>, vector<8x1xf32>
    tpu.vector_store %arg6[%c0_30, %c7_31], %59 {strides = array<i32>} : memref<8x8xf32, #tpu.memory_space<vmem>>, vector<8x1xf32>,
    %c8 = arith.constant 8 : index
    %c0_32 = arith.constant 0 : index
    %61 = vector.load %arg7[%c8, %c0_32] : memref<64x256xf32, #tpu.memory_space<vmem>>, vector<8x128xf32>
    %c48 = arith.constant 48 : index
    %c128_33 = arith.constant 128 : index
    %62 = vector.load %arg7[%c48, %c128_33] : memref<64x256xf32, #tpu.memory_space<vmem>>, vector<8x128xf32>
    %63 = tpu.concatenate %61, %62 in 1 : vector<8x128xf32>, vector<8x128xf32> -> vector<8x256xf32>
    %64 = arith.truncf %46 : vector<8x64xf32> to vector<8x64xbf16>
    %cst_34 = arith.constant dense<0.000000e+00> : vector<8x256xf32>
    %65 = tpu.matmul %64, %12, %cst_34 {dimension_numbers = #tpu.dot_dimension_numbers<[1], [0], [0], [1], [0, 0, 1, 1], [], []>} : vector<8x64xbf16>, vector<64x256xbf16>, vector<8x256xf32> -> vector<8x256xf32>
    %66 = arith.addf %63, %65 : vector<8x256xf32>
    %67 = arith.negf %66 : vector<8x256xf32>
    %68 = math.exp %67 : vector<8x256xf32>
    %cst_35 = arith.constant 1.000000e+00 : f32
    %69 = vector.broadcast %cst_35 : f32 to vector<8x256xf32>
    %70 = arith.addf %69, %68 : vector<8x256xf32>
    %71 = arith.divf %69, %70 : vector<8x256xf32>
    %72 = vector.extract_strided_slice %71 {offsets = [0, 0], sizes = [8, 32], strides = [1, 1]} : vector<8x256xf32> to vector<8x32xf32>
    %73 = vector.extract_strided_slice %71 {offsets = [0, 128], sizes = [8, 32], strides = [1, 1]} : vector<8x256xf32> to vector<8x32xf32>
    %74 = tpu.concatenate %72, %73 in 1 : vector<8x32xf32>, vector<8x32xf32> -> vector<8x64xf32>
    %75 = vector.extract_strided_slice %71 {offsets = [0, 32], sizes = [8, 32], strides = [1, 1]} : vector<8x256xf32> to vector<8x32xf32>
    %76 = vector.extract_strided_slice %71 {offsets = [0, 160], sizes = [8, 32], strides = [1, 1]} : vector<8x256xf32> to vector<8x32xf32>
    %77 = tpu.concatenate %75, %76 in 1 : vector<8x32xf32>, vector<8x32xf32> -> vector<8x64xf32>
    %78 = vector.extract_strided_slice %71 {offsets = [0, 64], sizes = [8, 32], strides = [1, 1]} : vector<8x256xf32> to vector<8x32xf32>
    %79 = vector.extract_strided_slice %71 {offsets = [0, 192], sizes = [8, 32], strides = [1, 1]} : vector<8x256xf32> to vector<8x32xf32>
    %80 = tpu.concatenate %78, %79 in 1 : vector<8x32xf32>, vector<8x32xf32> -> vector<8x64xf32>
    %cst_36 = arith.constant 2.000000e+00 : f32
    %81 = vector.broadcast %cst_36 : f32 to vector<8x64xf32>
    %82 = arith.mulf %81, %80 : vector<8x64xf32>
    %cst_37 = arith.constant 1.000000e+00 : f32
    %83 = vector.broadcast %cst_37 : f32 to vector<8x64xf32>
    %84 = arith.subf %82, %83 : vector<8x64xf32>
    %85 = vector.extract_strided_slice %71 {offsets = [0, 96], sizes = [8, 32], strides = [1, 1]} : vector<8x256xf32> to vector<8x32xf32>
    %86 = vector.extract_strided_slice %71 {offsets = [0, 224], sizes = [8, 32], strides = [1, 1]} : vector<8x256xf32> to vector<8x32xf32>
    %87 = tpu.concatenate %85, %86 in 1 : vector<8x32xf32>, vector<8x32xf32> -> vector<8x64xf32>
    %88 = arith.mulf %77, %44 : vector<8x64xf32>
    %89 = arith.mulf %74, %84 : vector<8x64xf32>
    %90 = arith.addf %88, %89 : vector<8x64xf32>
    %91 = math.tanh %90 : vector<8x64xf32>
    %92 = arith.mulf %87, %91 : vector<8x64xf32>
    %93 = vector.broadcast %7 : vector<1x64xf32> to vector<8x64xf32>
    %94 = arith.mulf %92, %93 : vector<8x64xf32>
    %95 = vector.extract_strided_slice %94 {offsets = [0, 0], sizes = [8, 32], strides = [1, 1]} : vector<8x64xf32> to vector<8x32xf32>
    %cst_38 = arith.constant dense<0.000000e+00> : vector<8xf32>
    %96 = vector.multi_reduction <add>, %95, %cst_38 [1] : vector<8x32xf32> to vector<8xf32>
    %97 = vector.shape_cast %96 : vector<8xf32> to vector<8x1xf32>
    %98 = vector.extract_strided_slice %94 {offsets = [0, 32], sizes = [8, 32], strides = [1, 1]} : vector<8x64xf32> to vector<8x32xf32>
    %cst_39 = arith.constant dense<0.000000e+00> : vector<8xf32>
    %99 = vector.multi_reduction <add>, %98, %cst_39 [1] : vector<8x32xf32> to vector<8xf32>
    %100 = vector.shape_cast %99 : vector<8xf32> to vector<8x1xf32>
    %c0_40 = arith.constant 0 : index
    %c1 = arith.constant 1 : index
    %101 = vector.load %arg6[%c0_40, %c1] : memref<8x8xf32, #tpu.memory_space<vmem>>, vector<8x1xf32>
    %102 = arith.addf %101, %97 : vector<8x1xf32>
    %c0_41 = arith.constant 0 : index
    %c1_42 = arith.constant 1 : index
    %103 = vector.load %arg6[%c0_41, %c1_42] : memref<8x8xf32, #tpu.memory_space<vmem>>, vector<8x1xf32>
    tpu.vector_store %arg6[%c0_41, %c1_42], %102 {strides = array<i32>} : memref<8x8xf32, #tpu.memory_space<vmem>>, vector<8x1xf32>,
    %c0_43 = arith.constant 0 : index
    %c6 = arith.constant 6 : index
    %104 = vector.load %arg6[%c0_43, %c6] : memref<8x8xf32, #tpu.memory_space<vmem>>, vector<8x1xf32>
    %105 = arith.addf %104, %100 : vector<8x1xf32>
    %c0_44 = arith.constant 0 : index
    %c6_45 = arith.constant 6 : index
    %106 = vector.load %arg6[%c0_44, %c6_45] : memref<8x8xf32, #tpu.memory_space<vmem>>, vector<8x1xf32>
    tpu.vector_store %arg6[%c0_44, %c6_45], %105 {strides = array<i32>} : memref<8x8xf32, #tpu.memory_space<vmem>>, vector<8x1xf32>,
    %c16 = arith.constant 16 : index
    %c0_46 = arith.constant 0 : index
    %107 = vector.load %arg7[%c16, %c0_46] : memref<64x256xf32, #tpu.memory_space<vmem>>, vector<8x128xf32>
    %c40 = arith.constant 40 : index
    %c128_47 = arith.constant 128 : index
    %108 = vector.load %arg7[%c40, %c128_47] : memref<64x256xf32, #tpu.memory_space<vmem>>, vector<8x128xf32>
    %109 = tpu.concatenate %107, %108 in 1 : vector<8x128xf32>, vector<8x128xf32> -> vector<8x256xf32>
    %110 = arith.truncf %92 : vector<8x64xf32> to vector<8x64xbf16>
    %cst_48 = arith.constant dense<0.000000e+00> : vector<8x256xf32>
    %111 = tpu.matmul %110, %12, %cst_48 {dimension_numbers = #tpu.dot_dimension_numbers<[1], [0], [0], [1], [0, 0, 1, 1], [], []>} : vector<8x64xbf16>, vector<64x256xbf16>, vector<8x256xf32> -> vector<8x256xf32>
    %112 = arith.addf %109, %111 : vector<8x256xf32>
    %113 = arith.negf %112 : vector<8x256xf32>
    %114 = math.exp %113 : vector<8x256xf32>
    %cst_49 = arith.constant 1.000000e+00 : f32
    %115 = vector.broadcast %cst_49 : f32 to vector<8x256xf32>
    %116 = arith.addf %115, %114 : vector<8x256xf32>
    %117 = arith.divf %115, %116 : vector<8x256xf32>
    %118 = vector.extract_strided_slice %117 {offsets = [0, 0], sizes = [8, 32], strides = [1, 1]} : vector<8x256xf32> to vector<8x32xf32>
    %119 = vector.extract_strided_slice %117 {offsets = [0, 128], sizes = [8, 32], strides = [1, 1]} : vector<8x256xf32> to vector<8x32xf32>
    %120 = tpu.concatenate %118, %119 in 1 : vector<8x32xf32>, vector<8x32xf32> -> vector<8x64xf32>
    %121 = vector.extract_strided_slice %117 {offsets = [0, 32], sizes = [8, 32], strides = [1, 1]} : vector<8x256xf32> to vector<8x32xf32>
    %122 = vector.extract_strided_slice %117 {offsets = [0, 160], sizes = [8, 32], strides = [1, 1]} : vector<8x256xf32> to vector<8x32xf32>
    %123 = tpu.concatenate %121, %122 in 1 : vector<8x32xf32>, vector<8x32xf32> -> vector<8x64xf32>
    %124 = vector.extract_strided_slice %117 {offsets = [0, 64], sizes = [8, 32], strides = [1, 1]} : vector<8x256xf32> to vector<8x32xf32>
    %125 = vector.extract_strided_slice %117 {offsets = [0, 192], sizes = [8, 32], strides = [1, 1]} : vector<8x256xf32> to vector<8x32xf32>
    %126 = tpu.concatenate %124, %125 in 1 : vector<8x32xf32>, vector<8x32xf32> -> vector<8x64xf32>
    %cst_50 = arith.constant 2.000000e+00 : f32
    %127 = vector.broadcast %cst_50 : f32 to vector<8x64xf32>
    %128 = arith.mulf %127, %126 : vector<8x64xf32>
    %cst_51 = arith.constant 1.000000e+00 : f32
    %129 = vector.broadcast %cst_51 : f32 to vector<8x64xf32>
    %130 = arith.subf %128, %129 : vector<8x64xf32>
    %131 = vector.extract_strided_slice %117 {offsets = [0, 96], sizes = [8, 32], strides = [1, 1]} : vector<8x256xf32> to vector<8x32xf32>
    %132 = vector.extract_strided_slice %117 {offsets = [0, 224], sizes = [8, 32], strides = [1, 1]} : vector<8x256xf32> to vector<8x32xf32>
    %133 = tpu.concatenate %131, %132 in 1 : vector<8x32xf32>, vector<8x32xf32> -> vector<8x64xf32>
    %134 = arith.mulf %123, %90 : vector<8x64xf32>
    %135 = arith.mulf %120, %130 : vector<8x64xf32>
    %136 = arith.addf %134, %135 : vector<8x64xf32>
    %137 = math.tanh %136 : vector<8x64xf32>
    %138 = arith.mulf %133, %137 : vector<8x64xf32>
    %139 = vector.broadcast %7 : vector<1x64xf32> to vector<8x64xf32>
    %140 = arith.mulf %138, %139 : vector<8x64xf32>
    %141 = vector.extract_strided_slice %140 {offsets = [0, 0], sizes = [8, 32], strides = [1, 1]} : vector<8x64xf32> to vector<8x32xf32>
    %cst_52 = arith.constant dense<0.000000e+00> : vector<8xf32>
    %142 = vector.multi_reduction <add>, %141, %cst_52 [1] : vector<8x32xf32> to vector<8xf32>
    %143 = vector.shape_cast %142 : vector<8xf32> to vector<8x1xf32>
    %144 = vector.extract_strided_slice %140 {offsets = [0, 32], sizes = [8, 32], strides = [1, 1]} : vector<8x64xf32> to vector<8x32xf32>
    %cst_53 = arith.constant dense<0.000000e+00> : vector<8xf32>
    %145 = vector.multi_reduction <add>, %144, %cst_53 [1] : vector<8x32xf32> to vector<8xf32>
    %146 = vector.shape_cast %145 : vector<8xf32> to vector<8x1xf32>
    %c0_54 = arith.constant 0 : index
    %c2 = arith.constant 2 : index
    %147 = vector.load %arg6[%c0_54, %c2] : memref<8x8xf32, #tpu.memory_space<vmem>>, vector<8x1xf32>
    %148 = arith.addf %147, %143 : vector<8x1xf32>
    %c0_55 = arith.constant 0 : index
    %c2_56 = arith.constant 2 : index
    %149 = vector.load %arg6[%c0_55, %c2_56] : memref<8x8xf32, #tpu.memory_space<vmem>>, vector<8x1xf32>
    tpu.vector_store %arg6[%c0_55, %c2_56], %148 {strides = array<i32>} : memref<8x8xf32, #tpu.memory_space<vmem>>, vector<8x1xf32>,
    %c0_57 = arith.constant 0 : index
    %c5 = arith.constant 5 : index
    %150 = vector.load %arg6[%c0_57, %c5] : memref<8x8xf32, #tpu.memory_space<vmem>>, vector<8x1xf32>
    %151 = arith.addf %150, %146 : vector<8x1xf32>
    %c0_58 = arith.constant 0 : index
    %c5_59 = arith.constant 5 : index
    %152 = vector.load %arg6[%c0_58, %c5_59] : memref<8x8xf32, #tpu.memory_space<vmem>>, vector<8x1xf32>
    tpu.vector_store %arg6[%c0_58, %c5_59], %151 {strides = array<i32>} : memref<8x8xf32, #tpu.memory_space<vmem>>, vector<8x1xf32>,
    %c24 = arith.constant 24 : index
    %c0_60 = arith.constant 0 : index
    %153 = vector.load %arg7[%c24, %c0_60] : memref<64x256xf32, #tpu.memory_space<vmem>>, vector<8x128xf32>
    %c32 = arith.constant 32 : index
    %c128_61 = arith.constant 128 : index
    %154 = vector.load %arg7[%c32, %c128_61] : memref<64x256xf32, #tpu.memory_space<vmem>>, vector<8x128xf32>
    %155 = tpu.concatenate %153, %154 in 1 : vector<8x128xf32>, vector<8x128xf32> -> vector<8x256xf32>
    %156 = arith.truncf %138 : vector<8x64xf32> to vector<8x64xbf16>
    %cst_62 = arith.constant dense<0.000000e+00> : vector<8x256xf32>
    %157 = tpu.matmul %156, %12, %cst_62 {dimension_numbers = #tpu.dot_dimension_numbers<[1], [0], [0], [1], [0, 0, 1, 1], [], []>} : vector<8x64xbf16>, vector<64x256xbf16>, vector<8x256xf32> -> vector<8x256xf32>
    %158 = arith.addf %155, %157 : vector<8x256xf32>
    %159 = arith.negf %158 : vector<8x256xf32>
    %160 = math.exp %159 : vector<8x256xf32>
    %cst_63 = arith.constant 1.000000e+00 : f32
    %161 = vector.broadcast %cst_63 : f32 to vector<8x256xf32>
    %162 = arith.addf %161, %160 : vector<8x256xf32>
    %163 = arith.divf %161, %162 : vector<8x256xf32>
    %164 = vector.extract_strided_slice %163 {offsets = [0, 0], sizes = [8, 32], strides = [1, 1]} : vector<8x256xf32> to vector<8x32xf32>
    %165 = vector.extract_strided_slice %163 {offsets = [0, 128], sizes = [8, 32], strides = [1, 1]} : vector<8x256xf32> to vector<8x32xf32>
    %166 = tpu.concatenate %164, %165 in 1 : vector<8x32xf32>, vector<8x32xf32> -> vector<8x64xf32>
    %167 = vector.extract_strided_slice %163 {offsets = [0, 32], sizes = [8, 32], strides = [1, 1]} : vector<8x256xf32> to vector<8x32xf32>
    %168 = vector.extract_strided_slice %163 {offsets = [0, 160], sizes = [8, 32], strides = [1, 1]} : vector<8x256xf32> to vector<8x32xf32>
    %169 = tpu.concatenate %167, %168 in 1 : vector<8x32xf32>, vector<8x32xf32> -> vector<8x64xf32>
    %170 = vector.extract_strided_slice %163 {offsets = [0, 64], sizes = [8, 32], strides = [1, 1]} : vector<8x256xf32> to vector<8x32xf32>
    %171 = vector.extract_strided_slice %163 {offsets = [0, 192], sizes = [8, 32], strides = [1, 1]} : vector<8x256xf32> to vector<8x32xf32>
    %172 = tpu.concatenate %170, %171 in 1 : vector<8x32xf32>, vector<8x32xf32> -> vector<8x64xf32>
    %cst_64 = arith.constant 2.000000e+00 : f32
    %173 = vector.broadcast %cst_64 : f32 to vector<8x64xf32>
    %174 = arith.mulf %173, %172 : vector<8x64xf32>
    %cst_65 = arith.constant 1.000000e+00 : f32
    %175 = vector.broadcast %cst_65 : f32 to vector<8x64xf32>
    %176 = arith.subf %174, %175 : vector<8x64xf32>
    %177 = vector.extract_strided_slice %163 {offsets = [0, 96], sizes = [8, 32], strides = [1, 1]} : vector<8x256xf32> to vector<8x32xf32>
    %178 = vector.extract_strided_slice %163 {offsets = [0, 224], sizes = [8, 32], strides = [1, 1]} : vector<8x256xf32> to vector<8x32xf32>
    %179 = tpu.concatenate %177, %178 in 1 : vector<8x32xf32>, vector<8x32xf32> -> vector<8x64xf32>
    %180 = arith.mulf %169, %136 : vector<8x64xf32>
    %181 = arith.mulf %166, %176 : vector<8x64xf32>
    %182 = arith.addf %180, %181 : vector<8x64xf32>
    %183 = math.tanh %182 : vector<8x64xf32>
    %184 = arith.mulf %179, %183 : vector<8x64xf32>
    %185 = vector.broadcast %7 : vector<1x64xf32> to vector<8x64xf32>
    %186 = arith.mulf %184, %185 : vector<8x64xf32>
    %187 = vector.extract_strided_slice %186 {offsets = [0, 0], sizes = [8, 32], strides = [1, 1]} : vector<8x64xf32> to vector<8x32xf32>
    %cst_66 = arith.constant dense<0.000000e+00> : vector<8xf32>
    %188 = vector.multi_reduction <add>, %187, %cst_66 [1] : vector<8x32xf32> to vector<8xf32>
    %189 = vector.shape_cast %188 : vector<8xf32> to vector<8x1xf32>
    %190 = vector.extract_strided_slice %186 {offsets = [0, 32], sizes = [8, 32], strides = [1, 1]} : vector<8x64xf32> to vector<8x32xf32>
    %cst_67 = arith.constant dense<0.000000e+00> : vector<8xf32>
    %191 = vector.multi_reduction <add>, %190, %cst_67 [1] : vector<8x32xf32> to vector<8xf32>
    %192 = vector.shape_cast %191 : vector<8xf32> to vector<8x1xf32>
    %c0_68 = arith.constant 0 : index
    %c3 = arith.constant 3 : index
    %193 = vector.load %arg6[%c0_68, %c3] : memref<8x8xf32, #tpu.memory_space<vmem>>, vector<8x1xf32>
    %194 = arith.addf %193, %189 : vector<8x1xf32>
    %c0_69 = arith.constant 0 : index
    %c3_70 = arith.constant 3 : index
    %195 = vector.load %arg6[%c0_69, %c3_70] : memref<8x8xf32, #tpu.memory_space<vmem>>, vector<8x1xf32>
    tpu.vector_store %arg6[%c0_69, %c3_70], %194 {strides = array<i32>} : memref<8x8xf32, #tpu.memory_space<vmem>>, vector<8x1xf32>,
    %c0_71 = arith.constant 0 : index
    %c4 = arith.constant 4 : index
    %196 = vector.load %arg6[%c0_71, %c4] : memref<8x8xf32, #tpu.memory_space<vmem>>, vector<8x1xf32>
    %197 = arith.addf %196, %192 : vector<8x1xf32>
    %c0_72 = arith.constant 0 : index
    %c4_73 = arith.constant 4 : index
    %198 = vector.load %arg6[%c0_72, %c4_73] : memref<8x8xf32, #tpu.memory_space<vmem>>, vector<8x1xf32>
    tpu.vector_store %arg6[%c0_72, %c4_73], %197 {strides = array<i32>} : memref<8x8xf32, #tpu.memory_space<vmem>>, vector<8x1xf32>,
    %c32_74 = arith.constant 32 : index
    %c0_75 = arith.constant 0 : index
    %199 = vector.load %arg7[%c32_74, %c0_75] : memref<64x256xf32, #tpu.memory_space<vmem>>, vector<8x128xf32>
    %c24_76 = arith.constant 24 : index
    %c128_77 = arith.constant 128 : index
    %200 = vector.load %arg7[%c24_76, %c128_77] : memref<64x256xf32, #tpu.memory_space<vmem>>, vector<8x128xf32>
    %201 = tpu.concatenate %199, %200 in 1 : vector<8x128xf32>, vector<8x128xf32> -> vector<8x256xf32>
    %202 = arith.truncf %184 : vector<8x64xf32> to vector<8x64xbf16>
    %cst_78 = arith.constant dense<0.000000e+00> : vector<8x256xf32>
    %203 = tpu.matmul %202, %12, %cst_78 {dimension_numbers = #tpu.dot_dimension_numbers<[1], [0], [0], [1], [0, 0, 1, 1], [], []>} : vector<8x64xbf16>, vector<64x256xbf16>, vector<8x256xf32> -> vector<8x256xf32>
    %204 = arith.addf %201, %203 : vector<8x256xf32>
    %205 = arith.negf %204 : vector<8x256xf32>
    %206 = math.exp %205 : vector<8x256xf32>
    %cst_79 = arith.constant 1.000000e+00 : f32
    %207 = vector.broadcast %cst_79 : f32 to vector<8x256xf32>
    %208 = arith.addf %207, %206 : vector<8x256xf32>
    %209 = arith.divf %207, %208 : vector<8x256xf32>
    %210 = vector.extract_strided_slice %209 {offsets = [0, 0], sizes = [8, 32], strides = [1, 1]} : vector<8x256xf32> to vector<8x32xf32>
    %211 = vector.extract_strided_slice %209 {offsets = [0, 128], sizes = [8, 32], strides = [1, 1]} : vector<8x256xf32> to vector<8x32xf32>
    %212 = tpu.concatenate %210, %211 in 1 : vector<8x32xf32>, vector<8x32xf32> -> vector<8x64xf32>
    %213 = vector.extract_strided_slice %209 {offsets = [0, 32], sizes = [8, 32], strides = [1, 1]} : vector<8x256xf32> to vector<8x32xf32>
    %214 = vector.extract_strided_slice %209 {offsets = [0, 160], sizes = [8, 32], strides = [1, 1]} : vector<8x256xf32> to vector<8x32xf32>
    %215 = tpu.concatenate %213, %214 in 1 : vector<8x32xf32>, vector<8x32xf32> -> vector<8x64xf32>
    %216 = vector.extract_strided_slice %209 {offsets = [0, 64], sizes = [8, 32], strides = [1, 1]} : vector<8x256xf32> to vector<8x32xf32>
    %217 = vector.extract_strided_slice %209 {offsets = [0, 192], sizes = [8, 32], strides = [1, 1]} : vector<8x256xf32> to vector<8x32xf32>
    %218 = tpu.concatenate %216, %217 in 1 : vector<8x32xf32>, vector<8x32xf32> -> vector<8x64xf32>
    %cst_80 = arith.constant 2.000000e+00 : f32
    %219 = vector.broadcast %cst_80 : f32 to vector<8x64xf32>
    %220 = arith.mulf %219, %218 : vector<8x64xf32>
    %cst_81 = arith.constant 1.000000e+00 : f32
    %221 = vector.broadcast %cst_81 : f32 to vector<8x64xf32>
    %222 = arith.subf %220, %221 : vector<8x64xf32>
    %223 = vector.extract_strided_slice %209 {offsets = [0, 96], sizes = [8, 32], strides = [1, 1]} : vector<8x256xf32> to vector<8x32xf32>
    %224 = vector.extract_strided_slice %209 {offsets = [0, 224], sizes = [8, 32], strides = [1, 1]} : vector<8x256xf32> to vector<8x32xf32>
    %225 = tpu.concatenate %223, %224 in 1 : vector<8x32xf32>, vector<8x32xf32> -> vector<8x64xf32>
    %226 = arith.mulf %215, %182 : vector<8x64xf32>
    %227 = arith.mulf %212, %222 : vector<8x64xf32>
    %228 = arith.addf %226, %227 : vector<8x64xf32>
    %229 = math.tanh %228 : vector<8x64xf32>
    %230 = arith.mulf %225, %229 : vector<8x64xf32>
    %231 = vector.broadcast %7 : vector<1x64xf32> to vector<8x64xf32>
    %232 = arith.mulf %230, %231 : vector<8x64xf32>
    %233 = vector.extract_strided_slice %232 {offsets = [0, 0], sizes = [8, 32], strides = [1, 1]} : vector<8x64xf32> to vector<8x32xf32>
    %cst_82 = arith.constant dense<0.000000e+00> : vector<8xf32>
    %234 = vector.multi_reduction <add>, %233, %cst_82 [1] : vector<8x32xf32> to vector<8xf32>
    %235 = vector.shape_cast %234 : vector<8xf32> to vector<8x1xf32>
    %236 = vector.extract_strided_slice %232 {offsets = [0, 32], sizes = [8, 32], strides = [1, 1]} : vector<8x64xf32> to vector<8x32xf32>
    %cst_83 = arith.constant dense<0.000000e+00> : vector<8xf32>
    %237 = vector.multi_reduction <add>, %236, %cst_83 [1] : vector<8x32xf32> to vector<8xf32>
    %238 = vector.shape_cast %237 : vector<8xf32> to vector<8x1xf32>
    %c0_84 = arith.constant 0 : index
    %c4_85 = arith.constant 4 : index
    %239 = vector.load %arg6[%c0_84, %c4_85] : memref<8x8xf32, #tpu.memory_space<vmem>>, vector<8x1xf32>
    %240 = arith.addf %239, %235 : vector<8x1xf32>
    %c0_86 = arith.constant 0 : index
    %c4_87 = arith.constant 4 : index
    %241 = vector.load %arg6[%c0_86, %c4_87] : memref<8x8xf32, #tpu.memory_space<vmem>>, vector<8x1xf32>
    tpu.vector_store %arg6[%c0_86, %c4_87], %240 {strides = array<i32>} : memref<8x8xf32, #tpu.memory_space<vmem>>, vector<8x1xf32>,
    %c0_88 = arith.constant 0 : index
    %c3_89 = arith.constant 3 : index
    %242 = vector.load %arg6[%c0_88, %c3_89] : memref<8x8xf32, #tpu.memory_space<vmem>>, vector<8x1xf32>
    %243 = arith.addf %242, %238 : vector<8x1xf32>
    %c0_90 = arith.constant 0 : index
    %c3_91 = arith.constant 3 : index
    %244 = vector.load %arg6[%c0_90, %c3_91] : memref<8x8xf32, #tpu.memory_space<vmem>>, vector<8x1xf32>
    tpu.vector_store %arg6[%c0_90, %c3_91], %243 {strides = array<i32>} : memref<8x8xf32, #tpu.memory_space<vmem>>, vector<8x1xf32>,
    %c40_92 = arith.constant 40 : index
    %c0_93 = arith.constant 0 : index
    %245 = vector.load %arg7[%c40_92, %c0_93] : memref<64x256xf32, #tpu.memory_space<vmem>>, vector<8x128xf32>
    %c16_94 = arith.constant 16 : index
    %c128_95 = arith.constant 128 : index
    %246 = vector.load %arg7[%c16_94, %c128_95] : memref<64x256xf32, #tpu.memory_space<vmem>>, vector<8x128xf32>
    %247 = tpu.concatenate %245, %246 in 1 : vector<8x128xf32>, vector<8x128xf32> -> vector<8x256xf32>
    %248 = arith.truncf %230 : vector<8x64xf32> to vector<8x64xbf16>
    %cst_96 = arith.constant dense<0.000000e+00> : vector<8x256xf32>
    %249 = tpu.matmul %248, %12, %cst_96 {dimension_numbers = #tpu.dot_dimension_numbers<[1], [0], [0], [1], [0, 0, 1, 1], [], []>} : vector<8x64xbf16>, vector<64x256xbf16>, vector<8x256xf32> -> vector<8x256xf32>
    %250 = arith.addf %247, %249 : vector<8x256xf32>
    %251 = arith.negf %250 : vector<8x256xf32>
    %252 = math.exp %251 : vector<8x256xf32>
    %cst_97 = arith.constant 1.000000e+00 : f32
    %253 = vector.broadcast %cst_97 : f32 to vector<8x256xf32>
    %254 = arith.addf %253, %252 : vector<8x256xf32>
    %255 = arith.divf %253, %254 : vector<8x256xf32>
    %256 = vector.extract_strided_slice %255 {offsets = [0, 0], sizes = [8, 32], strides = [1, 1]} : vector<8x256xf32> to vector<8x32xf32>
    %257 = vector.extract_strided_slice %255 {offsets = [0, 128], sizes = [8, 32], strides = [1, 1]} : vector<8x256xf32> to vector<8x32xf32>
    %258 = tpu.concatenate %256, %257 in 1 : vector<8x32xf32>, vector<8x32xf32> -> vector<8x64xf32>
    %259 = vector.extract_strided_slice %255 {offsets = [0, 32], sizes = [8, 32], strides = [1, 1]} : vector<8x256xf32> to vector<8x32xf32>
    %260 = vector.extract_strided_slice %255 {offsets = [0, 160], sizes = [8, 32], strides = [1, 1]} : vector<8x256xf32> to vector<8x32xf32>
    %261 = tpu.concatenate %259, %260 in 1 : vector<8x32xf32>, vector<8x32xf32> -> vector<8x64xf32>
    %262 = vector.extract_strided_slice %255 {offsets = [0, 64], sizes = [8, 32], strides = [1, 1]} : vector<8x256xf32> to vector<8x32xf32>
    %263 = vector.extract_strided_slice %255 {offsets = [0, 192], sizes = [8, 32], strides = [1, 1]} : vector<8x256xf32> to vector<8x32xf32>
    %264 = tpu.concatenate %262, %263 in 1 : vector<8x32xf32>, vector<8x32xf32> -> vector<8x64xf32>
    %cst_98 = arith.constant 2.000000e+00 : f32
    %265 = vector.broadcast %cst_98 : f32 to vector<8x64xf32>
    %266 = arith.mulf %265, %264 : vector<8x64xf32>
    %cst_99 = arith.constant 1.000000e+00 : f32
    %267 = vector.broadcast %cst_99 : f32 to vector<8x64xf32>
    %268 = arith.subf %266, %267 : vector<8x64xf32>
    %269 = vector.extract_strided_slice %255 {offsets = [0, 96], sizes = [8, 32], strides = [1, 1]} : vector<8x256xf32> to vector<8x32xf32>
    %270 = vector.extract_strided_slice %255 {offsets = [0, 224], sizes = [8, 32], strides = [1, 1]} : vector<8x256xf32> to vector<8x32xf32>
    %271 = tpu.concatenate %269, %270 in 1 : vector<8x32xf32>, vector<8x32xf32> -> vector<8x64xf32>
    %272 = arith.mulf %261, %228 : vector<8x64xf32>
    %273 = arith.mulf %258, %268 : vector<8x64xf32>
    %274 = arith.addf %272, %273 : vector<8x64xf32>
    %275 = math.tanh %274 : vector<8x64xf32>
    %276 = arith.mulf %271, %275 : vector<8x64xf32>
    %277 = vector.broadcast %7 : vector<1x64xf32> to vector<8x64xf32>
    %278 = arith.mulf %276, %277 : vector<8x64xf32>
    %279 = vector.extract_strided_slice %278 {offsets = [0, 0], sizes = [8, 32], strides = [1, 1]} : vector<8x64xf32> to vector<8x32xf32>
    %cst_100 = arith.constant dense<0.000000e+00> : vector<8xf32>
    %280 = vector.multi_reduction <add>, %279, %cst_100 [1] : vector<8x32xf32> to vector<8xf32>
    %281 = vector.shape_cast %280 : vector<8xf32> to vector<8x1xf32>
    %282 = vector.extract_strided_slice %278 {offsets = [0, 32], sizes = [8, 32], strides = [1, 1]} : vector<8x64xf32> to vector<8x32xf32>
    %cst_101 = arith.constant dense<0.000000e+00> : vector<8xf32>
    %283 = vector.multi_reduction <add>, %282, %cst_101 [1] : vector<8x32xf32> to vector<8xf32>
    %284 = vector.shape_cast %283 : vector<8xf32> to vector<8x1xf32>
    %c0_102 = arith.constant 0 : index
    %c5_103 = arith.constant 5 : index
    %285 = vector.load %arg6[%c0_102, %c5_103] : memref<8x8xf32, #tpu.memory_space<vmem>>, vector<8x1xf32>
    %286 = arith.addf %285, %281 : vector<8x1xf32>
    %c0_104 = arith.constant 0 : index
    %c5_105 = arith.constant 5 : index
    %287 = vector.load %arg6[%c0_104, %c5_105] : memref<8x8xf32, #tpu.memory_space<vmem>>, vector<8x1xf32>
    tpu.vector_store %arg6[%c0_104, %c5_105], %286 {strides = array<i32>} : memref<8x8xf32, #tpu.memory_space<vmem>>, vector<8x1xf32>,
    %c0_106 = arith.constant 0 : index
    %c2_107 = arith.constant 2 : index
    %288 = vector.load %arg6[%c0_106, %c2_107] : memref<8x8xf32, #tpu.memory_space<vmem>>, vector<8x1xf32>
    %289 = arith.addf %288, %284 : vector<8x1xf32>
    %c0_108 = arith.constant 0 : index
    %c2_109 = arith.constant 2 : index
    %290 = vector.load %arg6[%c0_108, %c2_109] : memref<8x8xf32, #tpu.memory_space<vmem>>, vector<8x1xf32>
    tpu.vector_store %arg6[%c0_108, %c2_109], %289 {strides = array<i32>} : memref<8x8xf32, #tpu.memory_space<vmem>>, vector<8x1xf32>,
    %c48_110 = arith.constant 48 : index
    %c0_111 = arith.constant 0 : index
    %291 = vector.load %arg7[%c48_110, %c0_111] : memref<64x256xf32, #tpu.memory_space<vmem>>, vector<8x128xf32>
    %c8_112 = arith.constant 8 : index
    %c128_113 = arith.constant 128 : index
    %292 = vector.load %arg7[%c8_112, %c128_113] : memref<64x256xf32, #tpu.memory_space<vmem>>, vector<8x128xf32>
    %293 = tpu.concatenate %291, %292 in 1 : vector<8x128xf32>, vector<8x128xf32> -> vector<8x256xf32>
    %294 = arith.truncf %276 : vector<8x64xf32> to vector<8x64xbf16>
    %cst_114 = arith.constant dense<0.000000e+00> : vector<8x256xf32>
    %295 = tpu.matmul %294, %12, %cst_114 {dimension_numbers = #tpu.dot_dimension_numbers<[1], [0], [0], [1], [0, 0, 1, 1], [], []>} : vector<8x64xbf16>, vector<64x256xbf16>, vector<8x256xf32> -> vector<8x256xf32>
    %296 = arith.addf %293, %295 : vector<8x256xf32>
    %297 = arith.negf %296 : vector<8x256xf32>
    %298 = math.exp %297 : vector<8x256xf32>
    %cst_115 = arith.constant 1.000000e+00 : f32
    %299 = vector.broadcast %cst_115 : f32 to vector<8x256xf32>
    %300 = arith.addf %299, %298 : vector<8x256xf32>
    %301 = arith.divf %299, %300 : vector<8x256xf32>
    %302 = vector.extract_strided_slice %301 {offsets = [0, 0], sizes = [8, 32], strides = [1, 1]} : vector<8x256xf32> to vector<8x32xf32>
    %303 = vector.extract_strided_slice %301 {offsets = [0, 128], sizes = [8, 32], strides = [1, 1]} : vector<8x256xf32> to vector<8x32xf32>
    %304 = tpu.concatenate %302, %303 in 1 : vector<8x32xf32>, vector<8x32xf32> -> vector<8x64xf32>
    %305 = vector.extract_strided_slice %301 {offsets = [0, 32], sizes = [8, 32], strides = [1, 1]} : vector<8x256xf32> to vector<8x32xf32>
    %306 = vector.extract_strided_slice %301 {offsets = [0, 160], sizes = [8, 32], strides = [1, 1]} : vector<8x256xf32> to vector<8x32xf32>
    %307 = tpu.concatenate %305, %306 in 1 : vector<8x32xf32>, vector<8x32xf32> -> vector<8x64xf32>
    %308 = vector.extract_strided_slice %301 {offsets = [0, 64], sizes = [8, 32], strides = [1, 1]} : vector<8x256xf32> to vector<8x32xf32>
    %309 = vector.extract_strided_slice %301 {offsets = [0, 192], sizes = [8, 32], strides = [1, 1]} : vector<8x256xf32> to vector<8x32xf32>
    %310 = tpu.concatenate %308, %309 in 1 : vector<8x32xf32>, vector<8x32xf32> -> vector<8x64xf32>
    %cst_116 = arith.constant 2.000000e+00 : f32
    %311 = vector.broadcast %cst_116 : f32 to vector<8x64xf32>
    %312 = arith.mulf %311, %310 : vector<8x64xf32>
    %cst_117 = arith.constant 1.000000e+00 : f32
    %313 = vector.broadcast %cst_117 : f32 to vector<8x64xf32>
    %314 = arith.subf %312, %313 : vector<8x64xf32>
    %315 = vector.extract_strided_slice %301 {offsets = [0, 96], sizes = [8, 32], strides = [1, 1]} : vector<8x256xf32> to vector<8x32xf32>
    %316 = vector.extract_strided_slice %301 {offsets = [0, 224], sizes = [8, 32], strides = [1, 1]} : vector<8x256xf32> to vector<8x32xf32>
    %317 = tpu.concatenate %315, %316 in 1 : vector<8x32xf32>, vector<8x32xf32> -> vector<8x64xf32>
    %318 = arith.mulf %307, %274 : vector<8x64xf32>
    %319 = arith.mulf %304, %314 : vector<8x64xf32>
    %320 = arith.addf %318, %319 : vector<8x64xf32>
    %321 = math.tanh %320 : vector<8x64xf32>
    %322 = arith.mulf %317, %321 : vector<8x64xf32>
    %323 = vector.broadcast %7 : vector<1x64xf32> to vector<8x64xf32>
    %324 = arith.mulf %322, %323 : vector<8x64xf32>
    %325 = vector.extract_strided_slice %324 {offsets = [0, 0], sizes = [8, 32], strides = [1, 1]} : vector<8x64xf32> to vector<8x32xf32>
    %cst_118 = arith.constant dense<0.000000e+00> : vector<8xf32>
    %326 = vector.multi_reduction <add>, %325, %cst_118 [1] : vector<8x32xf32> to vector<8xf32>
    %327 = vector.shape_cast %326 : vector<8xf32> to vector<8x1xf32>
    %328 = vector.extract_strided_slice %324 {offsets = [0, 32], sizes = [8, 32], strides = [1, 1]} : vector<8x64xf32> to vector<8x32xf32>
    %cst_119 = arith.constant dense<0.000000e+00> : vector<8xf32>
    %329 = vector.multi_reduction <add>, %328, %cst_119 [1] : vector<8x32xf32> to vector<8xf32>
    %330 = vector.shape_cast %329 : vector<8xf32> to vector<8x1xf32>
    %c0_120 = arith.constant 0 : index
    %c6_121 = arith.constant 6 : index
    %331 = vector.load %arg6[%c0_120, %c6_121] : memref<8x8xf32, #tpu.memory_space<vmem>>, vector<8x1xf32>
    %332 = arith.addf %331, %327 : vector<8x1xf32>
    %c0_122 = arith.constant 0 : index
    %c6_123 = arith.constant 6 : index
    %333 = vector.load %arg6[%c0_122, %c6_123] : memref<8x8xf32, #tpu.memory_space<vmem>>, vector<8x1xf32>
    tpu.vector_store %arg6[%c0_122, %c6_123], %332 {strides = array<i32>} : memref<8x8xf32, #tpu.memory_space<vmem>>, vector<8x1xf32>,
    %c0_124 = arith.constant 0 : index
    %c1_125 = arith.constant 1 : index
    %334 = vector.load %arg6[%c0_124, %c1_125] : memref<8x8xf32, #tpu.memory_space<vmem>>, vector<8x1xf32>
    %335 = arith.addf %334, %330 : vector<8x1xf32>
    %c0_126 = arith.constant 0 : index
    %c1_127 = arith.constant 1 : index
    %336 = vector.load %arg6[%c0_126, %c1_127] : memref<8x8xf32, #tpu.memory_space<vmem>>, vector<8x1xf32>
    tpu.vector_store %arg6[%c0_126, %c1_127], %335 {strides = array<i32>} : memref<8x8xf32, #tpu.memory_space<vmem>>, vector<8x1xf32>,
    %c56_128 = arith.constant 56 : index
    %c0_129 = arith.constant 0 : index
    %337 = vector.load %arg7[%c56_128, %c0_129] : memref<64x256xf32, #tpu.memory_space<vmem>>, vector<8x128xf32>
    %c0_130 = arith.constant 0 : index
    %c128_131 = arith.constant 128 : index
    %338 = vector.load %arg7[%c0_130, %c128_131] : memref<64x256xf32, #tpu.memory_space<vmem>>, vector<8x128xf32>
    %339 = tpu.concatenate %337, %338 in 1 : vector<8x128xf32>, vector<8x128xf32> -> vector<8x256xf32>
    %340 = arith.truncf %322 : vector<8x64xf32> to vector<8x64xbf16>
    %cst_132 = arith.constant dense<0.000000e+00> : vector<8x256xf32>
    %341 = tpu.matmul %340, %12, %cst_132 {dimension_numbers = #tpu.dot_dimension_numbers<[1], [0], [0], [1], [0, 0, 1, 1], [], []>} : vector<8x64xbf16>, vector<64x256xbf16>, vector<8x256xf32> -> vector<8x256xf32>
    %342 = arith.addf %339, %341 : vector<8x256xf32>
    %343 = arith.negf %342 : vector<8x256xf32>
    %344 = math.exp %343 : vector<8x256xf32>
    %cst_133 = arith.constant 1.000000e+00 : f32
    %345 = vector.broadcast %cst_133 : f32 to vector<8x256xf32>
    %346 = arith.addf %345, %344 : vector<8x256xf32>
    %347 = arith.divf %345, %346 : vector<8x256xf32>
    %348 = vector.extract_strided_slice %347 {offsets = [0, 0], sizes = [8, 32], strides = [1, 1]} : vector<8x256xf32> to vector<8x32xf32>
    %349 = vector.extract_strided_slice %347 {offsets = [0, 128], sizes = [8, 32], strides = [1, 1]} : vector<8x256xf32> to vector<8x32xf32>
    %350 = tpu.concatenate %348, %349 in 1 : vector<8x32xf32>, vector<8x32xf32> -> vector<8x64xf32>
    %351 = vector.extract_strided_slice %347 {offsets = [0, 32], sizes = [8, 32], strides = [1, 1]} : vector<8x256xf32> to vector<8x32xf32>
    %352 = vector.extract_strided_slice %347 {offsets = [0, 160], sizes = [8, 32], strides = [1, 1]} : vector<8x256xf32> to vector<8x32xf32>
    %353 = tpu.concatenate %351, %352 in 1 : vector<8x32xf32>, vector<8x32xf32> -> vector<8x64xf32>
    %354 = vector.extract_strided_slice %347 {offsets = [0, 64], sizes = [8, 32], strides = [1, 1]} : vector<8x256xf32> to vector<8x32xf32>
    %355 = vector.extract_strided_slice %347 {offsets = [0, 192], sizes = [8, 32], strides = [1, 1]} : vector<8x256xf32> to vector<8x32xf32>
    %356 = tpu.concatenate %354, %355 in 1 : vector<8x32xf32>, vector<8x32xf32> -> vector<8x64xf32>
    %cst_134 = arith.constant 2.000000e+00 : f32
    %357 = vector.broadcast %cst_134 : f32 to vector<8x64xf32>
    %358 = arith.mulf %357, %356 : vector<8x64xf32>
    %cst_135 = arith.constant 1.000000e+00 : f32
    %359 = vector.broadcast %cst_135 : f32 to vector<8x64xf32>
    %360 = arith.subf %358, %359 : vector<8x64xf32>
    %361 = vector.extract_strided_slice %347 {offsets = [0, 96], sizes = [8, 32], strides = [1, 1]} : vector<8x256xf32> to vector<8x32xf32>
    %362 = vector.extract_strided_slice %347 {offsets = [0, 224], sizes = [8, 32], strides = [1, 1]} : vector<8x256xf32> to vector<8x32xf32>
    %363 = tpu.concatenate %361, %362 in 1 : vector<8x32xf32>, vector<8x32xf32> -> vector<8x64xf32>
    %364 = arith.mulf %353, %320 : vector<8x64xf32>
    %365 = arith.mulf %350, %360 : vector<8x64xf32>
    %366 = arith.addf %364, %365 : vector<8x64xf32>
    %367 = math.tanh %366 : vector<8x64xf32>
    %368 = arith.mulf %363, %367 : vector<8x64xf32>
    %369 = vector.broadcast %7 : vector<1x64xf32> to vector<8x64xf32>
    %370 = arith.mulf %368, %369 : vector<8x64xf32>
    %371 = vector.extract_strided_slice %370 {offsets = [0, 0], sizes = [8, 32], strides = [1, 1]} : vector<8x64xf32> to vector<8x32xf32>
    %cst_136 = arith.constant dense<0.000000e+00> : vector<8xf32>
    %372 = vector.multi_reduction <add>, %371, %cst_136 [1] : vector<8x32xf32> to vector<8xf32>
    %373 = vector.shape_cast %372 : vector<8xf32> to vector<8x1xf32>
    %374 = vector.extract_strided_slice %370 {offsets = [0, 32], sizes = [8, 32], strides = [1, 1]} : vector<8x64xf32> to vector<8x32xf32>
    %cst_137 = arith.constant dense<0.000000e+00> : vector<8xf32>
    %375 = vector.multi_reduction <add>, %374, %cst_137 [1] : vector<8x32xf32> to vector<8xf32>
    %376 = vector.shape_cast %375 : vector<8xf32> to vector<8x1xf32>
    %c0_138 = arith.constant 0 : index
    %c7_139 = arith.constant 7 : index
    %377 = vector.load %arg6[%c0_138, %c7_139] : memref<8x8xf32, #tpu.memory_space<vmem>>, vector<8x1xf32>
    %378 = arith.addf %377, %373 : vector<8x1xf32>
    %c0_140 = arith.constant 0 : index
    %c7_141 = arith.constant 7 : index
    %379 = vector.load %arg6[%c0_140, %c7_141] : memref<8x8xf32, #tpu.memory_space<vmem>>, vector<8x1xf32>
    tpu.vector_store %arg6[%c0_140, %c7_141], %378 {strides = array<i32>} : memref<8x8xf32, #tpu.memory_space<vmem>>, vector<8x1xf32>,
    %c0_142 = arith.constant 0 : index
    %c0_143 = arith.constant 0 : index
    %380 = vector.load %arg6[%c0_142, %c0_143] : memref<8x8xf32, #tpu.memory_space<vmem>>, vector<8x1xf32>
    %381 = arith.addf %380, %376 : vector<8x1xf32>
    %c0_144 = arith.constant 0 : index
    %c0_145 = arith.constant 0 : index
    %382 = vector.load %arg6[%c0_144, %c0_145] : memref<8x8xf32, #tpu.memory_space<vmem>>, vector<8x1xf32>
    tpu.vector_store %arg6[%c0_144, %c0_145], %381 {strides = array<i32>} : memref<8x8xf32, #tpu.memory_space<vmem>>, vector<8x1xf32>,
    return
  }
}

</mosaic_0001>

<bundles_post_ra>
// kernel: custom_lstm_forward.2
= control target key start
LH: loop header
LB: loop body
LE: loop exit
PB: predicated region body
PF: predicated region fallthrough
CT: control target
= control target key end

     0   :  { %s2226_s0 = inlined_call_operand.vmem [shape: bf16[16,256], index: 0, kind: input, shape index: {}]   ;;  %s2227_s1 = inlined_call_operand.hbm [shape: bf16[64,256], index: 1, kind: input, shape index: {}]   ;;  %s2228_s2 = inlined_call_operand.vmem [shape: f32[1,256], index: 2, kind: input, shape index: {}]   ;;  %s2229_s3 = inlined_call_operand.vmem [shape: f32[1,64], index: 3, kind: input, shape index: {}]   ;;  %s2230_s4 = inlined_call_operand.<no memory space> [shape: f32[1,1], index: 4, kind: input, shape index: {}]   ;;  %s2231_s5 = inlined_call_operand.vmem [shape: bf16[8,2,16], index: 5, kind: input, shape index: {}]   ;;  %s2232_s6 = inlined_call_operand.<no memory space> [shape: bf16[], index: 6, kind: input, shape index: {}]   ;;  %s2233_s7 = inlined_call_operand.vmem [shape: f32[8,8], index: 7, kind: output, shape index: {}]  }
   0x1   :  { %v12_v0 = vstv %s2232_s6  ;;  %v17_v1 = vstv %s2230_s4 }
   0x2   :  { %v1682_v2 = vunpack.i.l.bf16 %v12_v0  ;;  %18 = vst [vmem:[#allocation8] sm:$0x1] %v17_v1 }
   0x3   :  { %19 = vsyncpa [#allocation10], 0  ;;  %s28_s30 = sshll.u32 %s2227_s1, 4  ;;  %s1629_s8 = smov [#allocation9]   ;;  %s29_s30 = int_to_ptr.hbm [resolvable:$true] %s28_s30 }
   0x4   :  { %s30_s9 = sshll.u32 %s1629_s8, 4  ;;  %s1630_s10 = smov 128   ;;  %s31_s9 = int_to_ptr.vmem [resolvable:$true] %s30_s9 }
   0x5   :  { %s1631_s11 = smov 8  }
   0x6   :  { %36 = dma.hbm_to_vmem [thread:$0]  %s29_s30, 1024, %s31_s9, [#allocation10], %s1630_s10, %s1630_s10, %s1631_s11  }
   0x7   :  { %1627 = dma.done.wait [#allocation10], 1024  }
   0x8   :  { %1628 = vsyncadd [#allocation10], 4294966272  ;;  %v53_v3 = vlaneseq  ;;  %v1503_v6 = vld [vmem:[%s2226_s0 + $0x4] sm:$0xf]  ;;  %v1417_v7 = vld [vmem:[%s2226_s0 + $0x8] sm:$0xf0] }
   0x9   :  { %v50_v8 = vld [vmem:[%s2231_s5] sm:$0x1]  ;;  %v1420_v9 = vor.u32 %v1503_v6, %v1417_v7  ;;  %v1390_v11 = vld [vmem:[%s2231_s5 + $0x1] sm:$0x1]  ;;  %v1391_v12 = vld [vmem:[%s2231_s5 + $0x2] sm:$0x1] }
   0xa   :  { %v1687_v4 = vshrl.u32 %v53_v3, 7  ;;  %v1689_v5 = vand.u32 127, %v53_v3  ;;  %v51_v10 = vunpack.c.l.bf16 %v50_v8  ;;  %v1392_v13 = vld [vmem:[%s2231_s5 + $0x3] sm:$0x1]  ;;  %v72_v14 = vunpack.c.l.bf16 %v1390_v11  ;;  %v1455_v17 = vld [vmem:[#allocation9 + $0x30] sm:$0xf] }
   0xb   :  { %v94_v15 = vunpack.c.l.bf16 %v1391_v12  ;;  %v116_v16 = vunpack.c.l.bf16 %v1392_v13  ;;  %v1512_v18 = vld [vmem:[#allocation9 + $0x34] sm:$0xf0]  ;;  %317 = vmatpush.bf16.msra.mxu1 %v1420_v9  ;;  %v1447_v21 = vld [vmem:[#allocation9 + $0x20] sm:$0xf]  ;;  %v1510_v22 = vld [vmem:[#allocation9 + $0x24] sm:$0xf0] }
   0xc   :  { %vm56_vm0 = vcmp.lt.s32.totalorder %v1687_v4, 2  ;;  %vm61_vm1 = vcmp.lt.s32.totalorder %v1689_v5, 16  ;;  %v1714_v20 = vor.u32 %v1512_v18, %v1455_v17  ;;  %v1439_v27 = vld [vmem:[#allocation9 + $0x10] sm:$0xf]  ;;  %v1508_v28 = vld [vmem:[#allocation9 + $0x14] sm:$0xf0]  ;;  %v1744_v40 = vor.u32 %v1510_v22, %v1447_v21 }
   0xd   :  { %v57_v19 = vsel %vm56_vm0, %v51_v10, %v1682_v2  ;;  %v78_v24 = vsel %vm56_vm0, %v72_v14, %v1682_v2  ;;  %v100_v25 = vsel %vm56_vm0, %v94_v15, %v1682_v2  ;;  %v122_v26 = vsel %vm56_vm0, %v116_v16, %v1682_v2  ;;  %v1511_v29 = vld [vmem:[#allocation9 + $0x34] sm:$0xf]  ;;  %v1457_v30 = vld [vmem:[#allocation9 + $0x38] sm:$0xf0]  ;;  %v1393_v31 = vld [vmem:[%s2231_s5 + $0x4] sm:$0x1] }
   0xe   :  { %v62_v23 = vsel %vm61_vm1, %v57_v19, %v1682_v2  ;;  %v83_v33 = vsel %vm61_vm1, %v78_v24, %v1682_v2  ;;  %v105_v34 = vsel %vm61_vm1, %v100_v25, %v1682_v2  ;;  %v127_v35 = vsel %vm61_vm1, %v122_v26, %v1682_v2  ;;  %423 = vmatpush.bf16.msra.mxu2 %v1714_v20  ;;  %v1394_v36 = vld [vmem:[%s2231_s5 + $0x5] sm:$0x1]  ;;  %v1431_v51 = vld [vmem:[#allocation9] sm:$0xf]  ;;  %v1506_v52 = vld [vmem:[#allocation9 + $0x4] sm:$0xf0] }
   0xf   :  { %v63_v32 = vpack.c.bf16 0.0, %v62_v23  ;;  %v85_v37 = vpack.c.bf16 0.0, %v83_v33  ;;  %v107_v38 = vpack.c.bf16 0.0, %v105_v34  ;;  %v129_v39 = vpack.c.bf16 0.0, %v127_v35  ;;  %v1509_v55 = vld [vmem:[#allocation9 + $0x24] sm:$0xf] }
  0x10   :  { %v1746_v41 = vor.u32 %v1511_v29, %v1457_v30  ;;  %v138_v42 = vunpack.c.l.bf16 %v1393_v31  ;;  %v160_v43 = vunpack.c.l.bf16 %v1394_v36  ;;  %v1749_v44 = vor.u32 %v1508_v28, %v1439_v27  ;;  %v1449_v56 = vld [vmem:[#allocation9 + $0x28] sm:$0xf0]  ;;  %v1415_v58 = vld [vmem:[%s2226_s0] sm:$0xf]  ;;  %v1504_v59 = vld [vmem:[%s2226_s0 + $0x4] sm:$0xf0] }
  0x11   :  { %66 = vst [vmem:[#allocation11] sm:$0xf] %v63_v32  ;;  %vm268_vm2 = vcmask 130048   ;;  %v1766_v54 = vor.u32 %v1506_v52, %v1431_v51  ;;  %v1768_v57 = vor.u32 %v1509_v55, %v1449_v56  ;;  %v1416_v60 = vor.u32 %v1504_v59, %v1415_v58  ;;  %v1507_v61 = vld [vmem:[#allocation9 + $0x14] sm:$0xf]  ;;  %s1634_s10 = smov 64  }
  0x12   :  { %88 = vst [vmem:[#allocation11 + $0x4] sm:$0xf] %v85_v37  ;;  %424 = vmatpush.bf16.msra.mxu2 %v1744_v40  ;;  %436 = vmatpush.bf16.msra.mxu3 %v1746_v41  ;;  %v144_v45 = vsel %vm56_vm0, %v138_v42, %v1682_v2  ;;  %v166_v46 = vsel %vm56_vm0, %v160_v43, %v1682_v2  ;;  %v1441_v62 = vld [vmem:[#allocation9 + $0x18] sm:$0xf0]  ;;  %v1505_v63 = vld [vmem:[#allocation9 + $0x4] sm:$0xf] }
  0x13   :  { %110 = vst [vmem:[#allocation11 + $0x8] sm:$0xf] %v107_v38  ;;  %v149_v47 = vsel %vm61_vm1, %v144_v45, %v1682_v2  ;;  %v171_v48 = vsel %vm61_vm1, %v166_v46, %v1682_v2  ;;  %928 = vmatpush.bf16.msrb.mxu1 %v1746_v41  ;;  %v1780_v0 = vor.u32 %v1507_v61, %v1441_v62  ;;  %v1433_v1 = vld [vmem:[#allocation9 + $0x8] sm:$0xf0]  ;;  %v1395_v3 = vld [vmem:[%s2231_s5 + $0x6] sm:$0x1] }
  0x14   :  { %132 = vst [vmem:[#allocation11 + $0xc] sm:$0xf] %v129_v39  ;;  %v151_v49 = vpack.c.bf16 0.0, %v149_v47  ;;  %v173_v50 = vpack.c.bf16 0.0, %v171_v48  ;;  %v1396_v6 = vld [vmem:[%s2231_s5 + $0x7] sm:$0x1]  ;;  %288 = vmatpush.bf16.msra.mxu0 %v1416_v60  ;;  %v182_v8 = vunpack.c.l.bf16 %v1395_v3  ;;  %v1791_v10 = vor.u32 %v1505_v63, %v1433_v1 }
  0x15   :  { %v1632_v7 = vmov 0   ;;  %v204_v9 = vunpack.c.l.bf16 %v1396_v6  ;;  %v232_v17 = vld [vmem:[%s2228_s2] sm:$0x3]  ;;  %s1633_s2 = smov 32   ;;  %s1635_s11 = smov 96   ;;  %vm489_vm11 = vcmask 261120  }
  0x16   :  { %425 = vmatpush.bf16.msra.mxu2 %v1749_v44  ;;  %154 = vst [vmem:[#allocation11 + $0x10] sm:$0xf] %v151_v49  ;;  %437 = vmatpush.bf16.msra.mxu3 %v1768_v57  ;;  %v188_v11 = vsel %vm56_vm0, %v182_v8, %v1682_v2  ;;  %v235_v18 = vperm.slane %v232_v17, 1  ;;  %v1846_v22 = vperm.slane %v232_v17, 0  ;;  %vm415_vm12 = vcmask 523264  }
  0x17   :  { %176 = vst [vmem:[#allocation11 + $0x14] sm:$0xf] %v173_v50  ;;  %929 = vmatpush.bf16.msrb.mxu1 %v1768_v57  ;;  %1520 = vset.pattern.permute.xlu0 %v1632_v7  ;;  %v210_v12 = vsel %vm56_vm0, %v204_v9, %v1682_v2  ;;  %v193_v13 = vsel %vm61_vm1, %v188_v11, %v1682_v2 }
  0x18   :  { %915 = vmatpush.bf16.msrb.mxu0 %v1714_v20  ;;  %v215_v14 = vsel %vm61_vm1, %v210_v12, %v1682_v2  ;;  %v195_v15 = vpack.c.bf16 0.0, %v193_v13 }
  0x19   :  { %v1499_v53 = vld [vmem:[#allocation11] sm:$0xff]  ;;  %v217_v16 = vpack.c.bf16 0.0, %v215_v14 }
  0x1a   :  { %1425 = vmatmul.msk.bf16.vlgmr.msra.gmra.mxu1 %vm268_vm2, %v1499_v53  ;;  %426 = vmatpush.bf16.msra.mxu2 %v1766_v54  ;;  %198 = vst [vmem:[#allocation11 + $0x18] sm:$0xf] %v195_v15 }
  0x1b   :  { %438 = vmatpush.bf16.msra.mxu3 %v1780_v0  ;;  %1421 = vmatmul.msk.bf16.vlgmr.msra.gmra.mxu0 %vm268_vm2, %v1499_v53  ;;  %220 = vst [vmem:[#allocation11 + $0x1c] sm:$0xf] %v217_v16  ;;  %v1500_v4 = vld [vmem:[#allocation11 + $0x8] sm:$0xff] }
  0x1c   :  { %930 = vmatpush.bf16.msrb.mxu1 %v1780_v0  ;;  %916 = vmatpush.bf16.msrb.mxu0 %v1744_v40 }
  0x1d   :  { %427 = vmatmul.bf16.vlgmr.msra.gmra.mxu2 %v1632_v7 }
  0x1e   :  { %549 = vmatpush.bf16.msrb.mxu2 %v1714_v20  ;;  %v1501_v2 = vld [vmem:[#allocation11 + $0x10] sm:$0xff] }
  0x1f   :  { %439 = vmatpush.bf16.msra.mxu3 %v1791_v10 }
  0x20   :  { %931 = vmatpush.bf16.msrb.mxu1 %v1791_v10  ;;  %917 = vmatpush.bf16.msrb.mxu0 %v1749_v44 }
  0x22   :  { %550 = vmatpush.bf16.msrb.mxu2 %v1744_v40  ;;  %440 = vmatmul.bf16.vlgmr.msra.gmra.mxu3 %v1632_v7  ;;  %v1502_v5 = vld [vmem:[#allocation11 + $0x18] sm:$0xff] }
  0x23   :  { %562 = vmatpush.bf16.msrb.mxu3 %v1746_v41 }
  0x24   :  { %1168 = vmatpush.bf16.msra.mxu1 %v1746_v41  ;;  %918 = vmatpush.bf16.msrb.mxu0 %v1766_v54 }
  0x26   :  { %551 = vmatpush.bf16.msrb.mxu2 %v1749_v44 }
  0x27   :  { %563 = vmatpush.bf16.msrb.mxu3 %v1768_v57 }
  0x28   :  { %1169 = vmatpush.bf16.msra.mxu1 %v1768_v57  ;;  %1155 = vmatpush.bf16.msra.mxu0 %v1714_v20 }
  0x2a   :  { %552 = vmatpush.bf16.msrb.mxu2 %v1766_v54  ;;  %1426 = vmatmul.msk.bf16.gmra.mxu1 %vm268_vm2, %v1500_v4 }
  0x2b   :  { %564 = vmatpush.bf16.msrb.mxu3 %v1780_v0  ;;  %1422 = vmatmul.msk.bf16.gmra.mxu0 %vm268_vm2, %v1500_v4 }
  0x2c   :  { %1170 = vmatpush.bf16.msra.mxu1 %v1780_v0  ;;  %1156 = vmatpush.bf16.msra.mxu0 %v1744_v40 }
  0x2e   :  { %671 = vmatpush.bf16.msra.mxu2 %v1714_v20 }
  0x2f   :  { %565 = vmatpush.bf16.msrb.mxu3 %v1791_v10 }
  0x30   :  { %1171 = vmatpush.bf16.msra.mxu1 %v1791_v10  ;;  %1157 = vmatpush.bf16.msra.mxu0 %v1749_v44 }
  0x32   :  { %672 = vmatpush.bf16.msra.mxu2 %v1744_v40 }
  0x33   :  { %684 = vmatpush.bf16.msra.mxu3 %v1746_v41 }
  0x34   :  { %1158 = vmatpush.bf16.msra.mxu0 %v1766_v54 }
  0x36   :  { %673 = vmatpush.bf16.msra.mxu2 %v1749_v44 }
  0x37   :  { %685 = vmatpush.bf16.msra.mxu3 %v1768_v57 }
  0x3a   :  { %674 = vmatpush.bf16.msra.mxu2 %v1766_v54  ;;  %1427 = vmatmul.msk.bf16.gmra.mxu1 %vm268_vm2, %v1501_v2 }
  0x3b   :  { %686 = vmatpush.bf16.msra.mxu3 %v1780_v0  ;;  %1423 = vmatmul.msk.bf16.gmra.mxu0 %vm268_vm2, %v1501_v2 }
  0x3f   :  { %687 = vmatpush.bf16.msra.mxu3 %v1791_v10 }
  0x4a   :  { %1428 = vmatmul.msk.bf16.gmra.mxu1 %vm268_vm2, %v1502_v5 }
  0x4b   :  { %1424 = vmatmul.msk.bf16.gmra.mxu0 %vm268_vm2, %v1502_v5 }
  0x97   :  { %v319_v19 = vpop.f32.mrf.mxu1 }
  0x98   :  { %v1844_v21 = vadd.f32 %v319_v19, %v235_v18  ;;  %v290_v23 = vpop.f32.mrf.mxu0 }
  0x99   :  { %v291_v24 = vadd.f32 %v290_v23, %v1846_v22 }
  0x9f   :  { %v321_v25 = vpop.f32.mrf.mxu1 }
  0xa0   :  { %v1849_v26 = vadd.f32 %v321_v25, %v235_v18  ;;  %v428_v27 = vpop.f32.mrf.mxu2 }
  0xa1   :  { %v445_v28 = vadd.f32 %v428_v27, %v291_v24 }
  0xa3   :  { %v1461_v29 = vmul.f32 -1.442695, %v445_v28 }
  0xa5   :  { %1523 = vpow2.f32 %v1461_v29  ;;  %v441_v33 = vpop.f32.mrf.mxu3 }
  0xa7   :  { %v324_v30 = vpop.f32.mrf.mxu1 }
  0xa8   :  { %v1851_v31 = vadd.f32 %v324_v30, %v235_v18  ;;  %v430_v32 = vpop.f32.mrf.mxu2 }
  0xab   :  { %v1524_v34 = vpop.eup %1523 }
  0xac   :  { %v453_v35 = vadd.f32 1.0, %v1524_v34 }
  0xad   :  { %v443_v38 = vpop.f32.mrf.mxu3 }
  0xae   :  { %1525 = vrcp.f32 %v453_v35  ;;  %v466_v48 = vand.u32 2147483648, %v453_v35  ;;  %vm460_vm3 = vweird.f32 %v453_v35  ;;  %v464_v50 = vand.u32 2147483647, %v453_v35  ;;  %v292_v38 = vpop.f32.mrf.mxu0 }
  0xaf   :  { %v326_v36 = vpop.f32.mrf.mxu1 }
  0xb0   :  { %v1853_v37 = vadd.f32 %v326_v36, %v235_v18  ;;  %v467_v51 = vor.u32 1.1754944e-38, %v466_v48  ;;  %vm465_vm6 = vcmp.eq.f32.partialorder %v464_v50, 8.507059e+37 }
  0xb4   :  { %v1526_v39 = vpop.eup %1525 }
  0xb5   :  { %v456_v42 = vmul.f32 %v1526_v39, %v453_v35  ;;  %vm461_vm4 = vweird.f32 %v1526_v39 }
  0xb6   :  { %vm462_vm5 = vmor %vm460_vm3, %vm461_vm4 }
  0xb7   :  { %v329_v43 = vpop.f32.mrf.mxu1  ;;  %v457_v45 = vsub.f32 1.0, %v456_v42 }
  0xb8   :  { %v1855_v46 = vadd.f32 %v329_v43, %v235_v18 }
  0xb9   :  { %v458_v47 = vmul.f32 %v1526_v39, %v457_v45 }
  0xbb   :  { %v459_v49 = vadd.f32 %v1526_v39, %v458_v47 }
  0xbd   :  { %v463_v52 = vsel %vm462_vm5, %v1526_v39, %v459_v49  ;;  %v293_v39 = vadd.f32 %v292_v38, %v1846_v22 }
  0xbe   :  { %v468_v53 = vsel %vm465_vm6, %v467_v51, %v463_v52 }
  0xbf   :  { %v331_v55 = vpop.f32.mrf.mxu1  ;;  %505 = vrot.lane.b32.xlu2 %v468_v53, %s1633_s2  ;;  %496 = vrot.lane.b32.xlu0 %v468_v53, %s1634_s10 }
  0xc0   :  { %v1859_v56 = vadd.f32 %v331_v55, %v235_v18 }
  0xc7   :  { %v334_v58 = vpop.f32.mrf.mxu1 }
  0xc8   :  { %v1861_v59 = vadd.f32 %v334_v58, %v235_v18 }
  0xcf   :  { %v336_v60 = vpop.f32.mrf.mxu1 }
  0xd0   :  { %v337_v61 = vadd.f32 %v336_v60, %v235_v18 }
  0xd2   :  { %v446_v62 = vadd.f32 %v441_v33, %v337_v61 }
  0xd4   :  { %v1462_v63 = vmul.f32 -1.442695, %v446_v62 }
  0xd6   :  { %1527 = vpow2.f32 %v1462_v63 }
  0xdc   :  { %v1528_v1 = vpop.eup %1527 }
  0xdd   :  { %v454_v3 = vadd.f32 1.0, %v1528_v1 }
  0xdf   :  { %1529 = vrcp.f32 %v454_v3  ;;  %v481_v9 = vand.u32 2147483648, %v454_v3  ;;  %v479_v12 = vand.u32 2147483647, %v454_v3  ;;  %vm475_vm8 = vweird.f32 %v454_v3 }
  0xe1   :  { %v482_v14 = vor.u32 1.1754944e-38, %v481_v9  ;;  %vm480_vm10 = vcmp.eq.f32.partialorder %v479_v12, 8.507059e+37 }
  0xe5   :  { %v1530_v6 = vpop.eup %1529 }
  0xe6   :  { %v471_v7 = vmul.f32 %v1530_v6, %v454_v3  ;;  %vm476_vm7 = vweird.f32 %v1530_v6 }
  0xe7   :  { %vm477_vm9 = vmor %vm475_vm8, %vm476_vm7 }
  0xe8   :  { %v472_v8 = vsub.f32 1.0, %v471_v7 }
  0xea   :  { %v473_v11 = vmul.f32 %v1530_v6, %v472_v8 }
  0xec   :  { %v474_v13 = vadd.f32 %v1530_v6, %v473_v11 }
  0xee   :  { %v478_v15 = vsel %vm477_vm9, %v1530_v6, %v474_v13 }
  0xef   :  { %v483_v16 = vsel %vm480_vm10, %v482_v14, %v478_v15 }
  0xf0   :  { %486 = vrot.lane.b32.xlu1 %v483_v16, %s1633_s2  ;;  %508 = vrot.lane.b32.xlu2 %v483_v16, %s1634_s10 }
  0xf1   :  { %499 = vrot.lane.b32.xlu0 %v483_v16, %s1635_s11 }
  0xf8   :  { %492 = vrot.lane.b32.xlu1 %v468_v53, %s1635_s11 }
 0x119   :  { %v506_v24 = vpop.permute.xlu2 %505 }
 0x131   :  { %v497_v4 = vpop.permute.xlu0 %496 }
 0x14a   :  { %v509_v32 = vpop.permute.xlu2 %508 }
 0x14b   :  { %v511_v34 = vsel %vm489_vm11, %v506_v24, %v509_v32 }
 0x162   :  { %v487_v2 = vpop.permute.xlu1 %486 }
 0x163   :  { %v500_v5 = vpop.permute.xlu0 %499  ;;  %v490_v25 = vsel %vm489_vm11, %v468_v53, %v487_v2 }
 0x164   :  { %v502_v17 = vsel %vm489_vm11, %v497_v4, %v500_v5 }
 0x165   :  { %v503_v18 = vmul.f32 2.0, %v502_v17 }
 0x167   :  { %v1463_v19 = vadd.f32 -1.0, %v503_v18 }
 0x169   :  { %v513_v28 = vmul.f32 %v1463_v19, %v490_v25 }
 0x16a   :  { %v493_v23 = vpop.permute.xlu1 %492 }
 0x16b   :  { %v495_v27 = vsel %vm489_vm11, %v493_v23, %v483_v16 }
 0x16c   :  { %v512_v29 = vmul.f32 0.0, %v495_v27 }
 0x16e   :  { %v1870_v30 = vadd.f32 %v513_v28, %v512_v29 }
 0x170   :  { %1531 = vtanh.f32 %v1870_v30 }
 0x176   :  { %v1532_v33 = vpop.eup %1531 }
 0x177   :  { %v1874_v35 = vmul.f32 %v1532_v33, %v511_v34 }
 0x179   :  { %v541_v36 = vpack.c.bf16 %v1874_v35, %v1874_v35 }
 0x17b   :  { %1464 = vmatmul.msk.bf16.vlgmr.msrb.gmra.mxu2 %vm415_vm12, %v541_v36  ;;  %1465 = vmatmul.msk.bf16.vlgmr.msrb.gmra.mxu3 %vm415_vm12, %v541_v36 }
 0x17c   :  { %793 = vmatpush.bf16.msrb.mxu2 %v1714_v20  ;;  %806 = vmatpush.bf16.msrb.mxu3 %v1746_v41 }
 0x180   :  { %794 = vmatpush.bf16.msrb.mxu2 %v1744_v40  ;;  %807 = vmatpush.bf16.msrb.mxu3 %v1768_v57 }
 0x184   :  { %795 = vmatpush.bf16.msrb.mxu2 %v1749_v44  ;;  %808 = vmatpush.bf16.msrb.mxu3 %v1780_v0 }
 0x188   :  { %796 = vmatpush.bf16.msrb.mxu2 %v1766_v54  ;;  %809 = vmatpush.bf16.msrb.mxu3 %v1791_v10 }
 0x1fe   :  { %v554_v42 = vpop.f32.mrf.mxu2  ;;  %v567_v43 = vpop.f32.mrf.mxu3 }
 0x1ff   :  { %v571_v45 = vadd.f32 %v554_v42, %v293_v39  ;;  %v572_v47 = vadd.f32 %v567_v43, %v1861_v59 }
 0x201   :  { %v1466_v48 = vmul.f32 -1.442695, %v571_v45  ;;  %v1467_v49 = vmul.f32 -1.442695, %v572_v47 }
 0x203   :  { %1533 = vpow2.f32 %v1466_v48 }
 0x204   :  { %1535 = vpow2.f32 %v1467_v49 }
 0x206   :  { %v556_v50 = vpop.f32.mrf.mxu2  ;;  %v569_v51 = vpop.f32.mrf.mxu3 }
 0x209   :  { %v1534_v52 = vpop.eup %1533 }
 0x20a   :  { %v1536_v53 = vpop.eup %1535  ;;  %v579_v55 = vadd.f32 1.0, %v1534_v52 }
 0x20b   :  { %v580_v58 = vadd.f32 1.0, %v1536_v53 }
 0x20c   :  { %1537 = vrcp.f32 %v579_v55  ;;  %v592_v6 = vand.u32 2147483648, %v579_v55  ;;  %v590_v8 = vand.u32 2147483647, %v579_v55  ;;  %vm586_vm15 = vweird.f32 %v579_v55 }
 0x20d   :  { %1539 = vrcp.f32 %v580_v58  ;;  %v607_v59 = vand.u32 2147483648, %v580_v58  ;;  %v605_v11 = vand.u32 2147483647, %v580_v58  ;;  %vm601_vm0 = vweird.f32 %v580_v58 }
 0x20e   :  { %v593_v14 = vor.u32 1.1754944e-38, %v592_v6  ;;  %vm591_vm3 = vcmp.eq.f32.partialorder %v590_v8, 8.507059e+37 }
 0x20f   :  { %v608_v15 = vor.u32 1.1754944e-38, %v607_v59  ;;  %vm606_vm4 = vcmp.eq.f32.partialorder %v605_v11, 8.507059e+37 }
 0x212   :  { %v1538_v60 = vpop.eup %1537 }
 0x213   :  { %v1540_v61 = vpop.eup %1539  ;;  %v582_v62 = vmul.f32 %v1538_v60, %v579_v55  ;;  %vm587_vm13 = vweird.f32 %v1538_v60 }
 0x214   :  { %v597_v63 = vmul.f32 %v1540_v61, %v580_v58  ;;  %vm602_vm14 = vweird.f32 %v1540_v61  ;;  %vm588_vm1 = vmor %vm586_vm15, %vm587_vm13 }
 0x215   :  { %v583_v1 = vsub.f32 1.0, %v582_v62  ;;  %vm603_vm2 = vmor %vm601_vm0, %vm602_vm14 }
 0x216   :  { %v598_v3 = vsub.f32 1.0, %v597_v63 }
 0x217   :  { %v584_v7 = vmul.f32 %v1538_v60, %v583_v1 }
 0x218   :  { %v599_v9 = vmul.f32 %v1540_v61, %v598_v3 }
 0x219   :  { %v585_v12 = vadd.f32 %v1538_v60, %v584_v7 }
 0x21a   :  { %v600_v13 = vadd.f32 %v1540_v61, %v599_v9 }
 0x21b   :  { %v589_v16 = vsel %vm588_vm1, %v1538_v60, %v585_v12 }
 0x21c   :  { %v604_v4 = vsel %vm603_vm2, %v1540_v61, %v600_v13  ;;  %v594_v2 = vsel %vm591_vm3, %v593_v14, %v589_v16 }
 0x21d   :  { %v609_v5 = vsel %vm606_vm4, %v608_v15, %v604_v4  ;;  %621 = vrot.lane.b32.xlu0 %v594_v2, %s1634_s10 }
 0x21e   :  { %612 = vrot.lane.b32.xlu2 %v609_v5, %s1633_s2  ;;  %624 = vrot.lane.b32.xlu1 %v609_v5, %s1635_s11 }
 0x225   :  { %617 = vrot.lane.b32.xlu0 %v594_v2, %s1635_s11 }
 0x226   :  { %633 = vrot.lane.b32.xlu2 %v609_v5, %s1634_s10  ;;  %630 = vrot.lane.b32.xlu1 %v594_v2, %s1633_s2 }
 0x278   :  { %v613_v24 = vpop.permute.xlu2 %612 }
 0x279   :  { %v615_v28 = vsel %vm489_vm11, %v594_v2, %v613_v24 }
 0x280   :  { %v634_v38 = vpop.permute.xlu2 %633 }
 0x28f   :  { %v622_v17 = vpop.permute.xlu0 %621 }
 0x290   :  { %v625_v18 = vpop.permute.xlu1 %624 }
 0x291   :  { %v627_v19 = vsel %vm489_vm11, %v622_v17, %v625_v18 }
 0x292   :  { %v628_v23 = vmul.f32 2.0, %v627_v19 }
 0x294   :  { %v1468_v25 = vadd.f32 -1.0, %v628_v23 }
 0x296   :  { %v638_v32 = vmul.f32 %v1468_v25, %v615_v28 }
 0x297   :  { %v618_v27 = vpop.permute.xlu0 %617 }
 0x298   :  { %v620_v29 = vsel %vm489_vm11, %v618_v27, %v609_v5  ;;  %v631_v36 = vpop.permute.xlu1 %630 }
 0x299   :  { %v637_v33 = vmul.f32 %v620_v29, %v1870_v30  ;;  %v636_v42 = vsel %vm489_vm11, %v631_v36, %v634_v38  ;;  %v295_v30 = vpop.f32.mrf.mxu0 }
 0x29a   :  { %v296_v47 = vadd.f32 %v295_v30, %v1846_v22 }
 0x29b   :  { %v1900_v34 = vadd.f32 %v638_v32, %v637_v33 }
 0x29d   :  { %1541 = vtanh.f32 %v1900_v34 }
 0x2a3   :  { %v1542_v39 = vpop.eup %1541 }
 0x2a4   :  { %v1904_v43 = vmul.f32 %v1542_v39, %v636_v42 }
 0x2a6   :  { %v663_v45 = vpack.c.bf16 %v1904_v43, %v1904_v43 }
 0x2a8   :  { %1469 = vmatmul.msk.bf16.vlgmr.msra.gmra.mxu2 %vm415_vm12, %v663_v45  ;;  %1470 = vmatmul.msk.bf16.vlgmr.msra.gmra.mxu3 %vm415_vm12, %v663_v45 }
 0x2a9   :  { %1035 = vmatpush.bf16.msra.mxu2 %v1714_v20  ;;  %1048 = vmatpush.bf16.msra.mxu3 %v1746_v41 }
 0x2ad   :  { %1036 = vmatpush.bf16.msra.mxu2 %v1744_v40  ;;  %1049 = vmatpush.bf16.msra.mxu3 %v1768_v57 }
 0x2b1   :  { %1037 = vmatpush.bf16.msra.mxu2 %v1749_v44  ;;  %1050 = vmatpush.bf16.msra.mxu3 %v1780_v0 }
 0x2b5   :  { %1038 = vmatpush.bf16.msra.mxu2 %v1766_v54  ;;  %1051 = vmatpush.bf16.msra.mxu3 %v1791_v10 }
 0x32b   :  { %v676_v48 = vpop.f32.mrf.mxu2  ;;  %v689_v49 = vpop.f32.mrf.mxu3 }
 0x32c   :  { %v693_v50 = vadd.f32 %v676_v48, %v296_v47  ;;  %v694_v51 = vadd.f32 %v689_v49, %v1859_v56 }
 0x32e   :  { %v1471_v52 = vmul.f32 -1.442695, %v693_v50  ;;  %v1472_v53 = vmul.f32 -1.442695, %v694_v51 }
 0x330   :  { %1543 = vpow2.f32 %v1471_v52 }
 0x331   :  { %1545 = vpow2.f32 %v1472_v53 }
 0x333   :  { %v678_v55 = vpop.f32.mrf.mxu2  ;;  %v691_v58 = vpop.f32.mrf.mxu3 }
 0x336   :  { %v1544_v60 = vpop.eup %1543 }
 0x337   :  { %v1546_v61 = vpop.eup %1545  ;;  %v701_v62 = vadd.f32 1.0, %v1544_v60 }
 0x338   :  { %v702_v63 = vadd.f32 1.0, %v1546_v61 }
 0x339   :  { %1547 = vrcp.f32 %v701_v62  ;;  %v714_v9 = vand.u32 2147483648, %v701_v62  ;;  %v712_v12 = vand.u32 2147483647, %v701_v62  ;;  %vm708_vm7 = vweird.f32 %v701_v62 }
 0x33a   :  { %1549 = vrcp.f32 %v702_v63  ;;  %v729_v56 = vand.u32 2147483648, %v702_v63  ;;  %v727_v14 = vand.u32 2147483647, %v702_v63  ;;  %vm723_vm8 = vweird.f32 %v702_v63 }
 0x33b   :  { %v715_v4 = vor.u32 1.1754944e-38, %v714_v9  ;;  %vm713_vm13 = vcmp.eq.f32.partialorder %v712_v12, 8.507059e+37 }
 0x33c   :  { %v730_v2 = vor.u32 1.1754944e-38, %v729_v56  ;;  %vm728_vm14 = vcmp.eq.f32.partialorder %v727_v14, 8.507059e+37 }
 0x33f   :  { %v1548_v1 = vpop.eup %1547 }
 0x340   :  { %v1550_v3 = vpop.eup %1549  ;;  %v704_v6 = vmul.f32 %v1548_v1, %v701_v62  ;;  %vm709_vm5 = vweird.f32 %v1548_v1 }
 0x341   :  { %v719_v59 = vmul.f32 %v1550_v3, %v702_v63  ;;  %vm724_vm6 = vweird.f32 %v1550_v3  ;;  %vm710_vm9 = vmor %vm708_vm7, %vm709_vm5 }
 0x342   :  { %v705_v7 = vsub.f32 1.0, %v704_v6  ;;  %vm725_vm10 = vmor %vm723_vm8, %vm724_vm6 }
 0x343   :  { %v720_v8 = vsub.f32 1.0, %v719_v59 }
 0x344   :  { %v706_v11 = vmul.f32 %v1548_v1, %v705_v7 }
 0x345   :  { %v721_v13 = vmul.f32 %v1550_v3, %v720_v8 }
 0x346   :  { %v707_v15 = vadd.f32 %v1548_v1, %v706_v11 }
 0x347   :  { %v722_v16 = vadd.f32 %v1550_v3, %v721_v13 }
 0x348   :  { %v711_v5 = vsel %vm710_vm9, %v1548_v1, %v707_v15 }
 0x349   :  { %v726_v17 = vsel %vm725_vm10, %v1550_v3, %v722_v16  ;;  %v716_v18 = vsel %vm713_vm13, %v715_v4, %v711_v5 }
 0x34a   :  { %v731_v19 = vsel %vm728_vm14, %v730_v2, %v726_v17  ;;  %743 = vrot.lane.b32.xlu0 %v716_v18, %s1634_s10 }
 0x34b   :  { %734 = vrot.lane.b32.xlu2 %v731_v19, %s1633_s2  ;;  %746 = vrot.lane.b32.xlu1 %v731_v19, %s1635_s11 }
 0x352   :  { %739 = vrot.lane.b32.xlu0 %v716_v18, %s1635_s11 }
 0x353   :  { %755 = vrot.lane.b32.xlu2 %v731_v19, %s1634_s10  ;;  %752 = vrot.lane.b32.xlu1 %v716_v18, %s1633_s2 }
 0x3a5   :  { %v735_v28 = vpop.permute.xlu2 %734 }
 0x3a6   :  { %v737_v33 = vsel %vm489_vm11, %v716_v18, %v735_v28 }
 0x3ad   :  { %v756_v30 = vpop.permute.xlu2 %755 }
 0x3bc   :  { %v744_v23 = vpop.permute.xlu0 %743 }
 0x3bd   :  { %v747_v24 = vpop.permute.xlu1 %746 }
 0x3be   :  { %v749_v25 = vsel %vm489_vm11, %v744_v23, %v747_v24 }
 0x3bf   :  { %v750_v27 = vmul.f32 2.0, %v749_v25 }
 0x3c1   :  { %v1473_v29 = vadd.f32 -1.0, %v750_v27 }
 0x3c3   :  { %v760_v38 = vmul.f32 %v1473_v29, %v737_v33 }
 0x3c4   :  { %v740_v32 = vpop.permute.xlu0 %739 }
 0x3c5   :  { %v742_v36 = vsel %vm489_vm11, %v740_v32, %v731_v19  ;;  %v753_v45 = vpop.permute.xlu1 %752 }
 0x3c6   :  { %v759_v39 = vmul.f32 %v742_v36, %v1900_v34  ;;  %v758_v48 = vsel %vm489_vm11, %v753_v45, %v756_v30  ;;  %v297_v34 = vpop.f32.mrf.mxu0 }
 0x3c7   :  { %v298_v51 = vadd.f32 %v297_v34, %v1846_v22 }
 0x3c8   :  { %v1930_v42 = vadd.f32 %v760_v38, %v759_v39 }
 0x3ca   :  { %1551 = vtanh.f32 %v1930_v42 }
 0x3d0   :  { %v1552_v47 = vpop.eup %1551 }
 0x3d1   :  { %v1934_v49 = vmul.f32 %v1552_v47, %v758_v48  ;;  %v300_v47 = vpop.f32.mrf.mxu0 }
 0x3d2   :  { %v301_v34 = vadd.f32 %v300_v47, %v1846_v22 }
 0x3d3   :  { %v785_v50 = vpack.c.bf16 %v1934_v49, %v1934_v49 }
 0x3d5   :  { %1474 = vmatmul.msk.bf16.vlgmr.msrb.gmra.mxu2 %vm415_vm12, %v785_v50  ;;  %1475 = vmatmul.msk.bf16.vlgmr.msrb.gmra.mxu3 %vm415_vm12, %v785_v50 }
 0x3d6   :  { %1275 = vmatpush.bf16.msrb.mxu2 %v1714_v20  ;;  %1288 = vmatpush.bf16.msrb.mxu3 %v1746_v41 }
 0x3da   :  { %1276 = vmatpush.bf16.msrb.mxu2 %v1744_v40  ;;  %1289 = vmatpush.bf16.msrb.mxu3 %v1768_v57 }
 0x3de   :  { %1277 = vmatpush.bf16.msrb.mxu2 %v1749_v44  ;;  %1290 = vmatpush.bf16.msrb.mxu3 %v1780_v0 }
 0x3e2   :  { %1278 = vmatpush.bf16.msrb.mxu2 %v1766_v54  ;;  %1291 = vmatpush.bf16.msrb.mxu3 %v1791_v10 }
 0x458   :  { %v798_v52 = vpop.f32.mrf.mxu2  ;;  %v811_v53 = vpop.f32.mrf.mxu3 }
 0x459   :  { %v815_v20 = vadd.f32 %v798_v52, %v298_v51  ;;  %v816_v41 = vadd.f32 %v811_v53, %v1855_v46 }
 0x45b   :  { %v1476_v55 = vmul.f32 -1.442695, %v815_v20  ;;  %v1477_v40 = vmul.f32 -1.442695, %v816_v41 }
 0x45d   :  { %1553 = vpow2.f32 %v1476_v55 }
 0x45e   :  { %1555 = vpow2.f32 %v1477_v40 }
 0x460   :  { %v800_v57 = vpop.f32.mrf.mxu2  ;;  %v813_v44 = vpop.f32.mrf.mxu3 }
 0x463   :  { %v1554_v58 = vpop.eup %1553 }
 0x464   :  { %v1556_v0 = vpop.eup %1555  ;;  %v823_v60 = vadd.f32 1.0, %v1554_v58 }
 0x465   :  { %v824_v54 = vadd.f32 1.0, %v1556_v0 }
 0x466   :  { %1557 = vrcp.f32 %v823_v60  ;;  %v836_v6 = vand.u32 2147483648, %v823_v60  ;;  %v834_v7 = vand.u32 2147483647, %v823_v60  ;;  %vm830_vm1 = vweird.f32 %v823_v60 }
 0x467   :  { %1559 = vrcp.f32 %v824_v54  ;;  %v851_v46 = vand.u32 2147483648, %v824_v54  ;;  %v849_v9 = vand.u32 2147483647, %v824_v54  ;;  %vm845_vm2 = vweird.f32 %v824_v54 }
 0x468   :  { %v837_v12 = vor.u32 1.1754944e-38, %v836_v6  ;;  %vm835_vm5 = vcmp.eq.f32.partialorder %v834_v7, 8.507059e+37 }
 0x469   :  { %v852_v13 = vor.u32 1.1754944e-38, %v851_v46  ;;  %vm850_vm6 = vcmp.eq.f32.partialorder %v849_v9, 8.507059e+37 }
 0x46c   :  { %v1558_v10 = vpop.eup %1557 }
 0x46d   :  { %v1560_v61 = vpop.eup %1559  ;;  %v826_v62 = vmul.f32 %v1558_v10, %v823_v60  ;;  %vm831_vm15 = vweird.f32 %v1558_v10 }
 0x46e   :  { %v841_v63 = vmul.f32 %v1560_v61, %v824_v54  ;;  %vm846_vm0 = vweird.f32 %v1560_v61  ;;  %vm832_vm3 = vmor %vm830_vm1, %vm831_vm15 }
 0x46f   :  { %v827_v1 = vsub.f32 1.0, %v826_v62  ;;  %vm847_vm4 = vmor %vm845_vm2, %vm846_vm0 }
 0x470   :  { %v842_v3 = vsub.f32 1.0, %v841_v63 }
 0x471   :  { %v828_v59 = vmul.f32 %v1558_v10, %v827_v1 }
 0x472   :  { %v843_v8 = vmul.f32 %v1560_v61, %v842_v3 }
 0x473   :  { %v829_v56 = vadd.f32 %v1558_v10, %v828_v59 }
 0x474   :  { %v844_v11 = vadd.f32 %v1560_v61, %v843_v8 }
 0x475   :  { %v833_v14 = vsel %vm832_vm3, %v1558_v10, %v829_v56 }
 0x476   :  { %v848_v15 = vsel %vm847_vm4, %v1560_v61, %v844_v11  ;;  %v838_v16 = vsel %vm835_vm5, %v837_v12, %v833_v14 }
 0x477   :  { %v853_v4 = vsel %vm850_vm6, %v852_v13, %v848_v15  ;;  %865 = vrot.lane.b32.xlu0 %v838_v16, %s1634_s10 }
 0x478   :  { %856 = vrot.lane.b32.xlu2 %v853_v4, %s1633_s2  ;;  %868 = vrot.lane.b32.xlu1 %v853_v4, %s1635_s11 }
 0x47f   :  { %861 = vrot.lane.b32.xlu0 %v838_v16, %s1635_s11 }
 0x480   :  { %877 = vrot.lane.b32.xlu2 %v853_v4, %s1634_s10  ;;  %874 = vrot.lane.b32.xlu1 %v838_v16, %s1633_s2 }
 0x4d2   :  { %v857_v19 = vpop.permute.xlu2 %856 }
 0x4d3   :  { %v859_v25 = vsel %vm489_vm11, %v838_v16, %v857_v19 }
 0x4da   :  { %v878_v36 = vpop.permute.xlu2 %877 }
 0x4e9   :  { %v866_v2 = vpop.permute.xlu0 %865 }
 0x4ea   :  { %v869_v5 = vpop.permute.xlu1 %868 }
 0x4eb   :  { %v871_v17 = vsel %vm489_vm11, %v866_v2, %v869_v5 }
 0x4ec   :  { %v872_v18 = vmul.f32 2.0, %v871_v17 }
 0x4ee   :  { %v1478_v23 = vadd.f32 -1.0, %v872_v18 }
 0x4f0   :  { %v882_v28 = vmul.f32 %v1478_v23, %v859_v25 }
 0x4f1   :  { %v862_v24 = vpop.permute.xlu0 %861 }
 0x4f2   :  { %v864_v27 = vsel %vm489_vm11, %v862_v24, %v853_v4  ;;  %v875_v33 = vpop.permute.xlu1 %874 }
 0x4f3   :  { %v881_v29 = vmul.f32 %v864_v27, %v1930_v42  ;;  %v880_v39 = vsel %vm489_vm11, %v875_v33, %v878_v36  ;;  %v1970_v42 = vpop.f32.mrf.mxu0 }
 0x4f5   :  { %v1960_v32 = vadd.f32 %v882_v28, %v881_v29 }
 0x4f7   :  { %1561 = vtanh.f32 %v1960_v32 }
 0x4fb   :  { %v1972_v48 = vpop.f32.mrf.mxu0 }
 0x4fd   :  { %v1562_v38 = vpop.eup %1561 }
 0x4fe   :  { %v1964_v45 = vmul.f32 %v1562_v38, %v880_v39 }
 0x500   :  { %v907_v30 = vpack.c.bf16 %v1964_v45, %v1964_v45 }
 0x502   :  { %1479 = vmatmul.msk.bf16.vlgmr.msrb.gmra.mxu0 %vm415_vm12, %v907_v30  ;;  %1480 = vmatmul.msk.bf16.vlgmr.msrb.gmra.mxu1 %vm415_vm12, %v907_v30 }
 0x503   :  { %v1974_v50 = vpop.f32.mrf.mxu0 }
 0x57f   :  { %v920_v51 = vpop.f32.mrf.mxu0  ;;  %v933_v52 = vpop.f32.mrf.mxu1 }
 0x580   :  { %v937_v53 = vadd.f32 %v920_v51, %v301_v34  ;;  %v938_v20 = vadd.f32 %v933_v52, %v1853_v37 }
 0x582   :  { %v1481_v41 = vmul.f32 -1.442695, %v937_v53  ;;  %v1482_v55 = vmul.f32 -1.442695, %v938_v20 }
 0x584   :  { %1563 = vpow2.f32 %v1481_v41 }
 0x585   :  { %1565 = vpow2.f32 %v1482_v55 }
 0x587   :  { %v922_v40 = vpop.f32.mrf.mxu0  ;;  %v935_v57 = vpop.f32.mrf.mxu1 }
 0x58a   :  { %v1564_v44 = vpop.eup %1563 }
 0x58b   :  { %v1566_v58 = vpop.eup %1565  ;;  %v945_v0 = vadd.f32 1.0, %v1564_v44 }
 0x58c   :  { %v946_v60 = vadd.f32 1.0, %v1566_v58 }
 0x58d   :  { %1567 = vrcp.f32 %v945_v0  ;;  %v958_v3 = vand.u32 2147483648, %v945_v0  ;;  %v956_v46 = vand.u32 2147483647, %v945_v0  ;;  %vm952_vm9 = vweird.f32 %v945_v0 }
 0x58e   :  { %1569 = vrcp.f32 %v946_v60  ;;  %v973_v37 = vand.u32 2147483648, %v946_v60  ;;  %v971_v7 = vand.u32 2147483647, %v946_v60  ;;  %vm967_vm10 = vweird.f32 %v946_v60 }
 0x58f   :  { %v959_v56 = vor.u32 1.1754944e-38, %v958_v3  ;;  %vm957_vm15 = vcmp.eq.f32.partialorder %v956_v46, 8.507059e+37 }
 0x590   :  { %v974_v11 = vor.u32 1.1754944e-38, %v973_v37  ;;  %vm972_vm0 = vcmp.eq.f32.partialorder %v971_v7, 8.507059e+37 }
 0x593   :  { %v1568_v54 = vpop.eup %1567 }
 0x594   :  { %v1570_v10 = vpop.eup %1569  ;;  %v948_v61 = vmul.f32 %v1568_v54, %v945_v0  ;;  %vm953_vm7 = vweird.f32 %v1568_v54 }
 0x595   :  { %v963_v62 = vmul.f32 %v1570_v10, %v946_v60  ;;  %vm968_vm8 = vweird.f32 %v1570_v10  ;;  %vm954_vm13 = vmor %vm952_vm9, %vm953_vm7 }
 0x596   :  { %v949_v63 = vsub.f32 1.0, %v948_v61  ;;  %vm969_vm14 = vmor %vm967_vm10, %vm968_vm8 }
 0x597   :  { %v964_v1 = vsub.f32 1.0, %v963_v62 }
 0x598   :  { %v950_v6 = vmul.f32 %v1568_v54, %v949_v63 }
 0x599   :  { %v965_v59 = vmul.f32 %v1570_v10, %v964_v1 }
 0x59a   :  { %v951_v8 = vadd.f32 %v1568_v54, %v950_v6 }
 0x59b   :  { %v966_v9 = vadd.f32 %v1570_v10, %v965_v59 }
 0x59c   :  { %v955_v12 = vsel %vm954_vm13, %v1568_v54, %v951_v8 }
 0x59d   :  { %v970_v13 = vsel %vm969_vm14, %v1570_v10, %v966_v9  ;;  %v960_v14 = vsel %vm957_vm15, %v959_v56, %v955_v12 }
 0x59e   :  { %v975_v15 = vsel %vm972_vm0, %v974_v11, %v970_v13  ;;  %987 = vrot.lane.b32.xlu0 %v960_v14, %s1634_s10 }
 0x59f   :  { %978 = vrot.lane.b32.xlu2 %v975_v15, %s1633_s2  ;;  %990 = vrot.lane.b32.xlu1 %v975_v15, %s1635_s11 }
 0x5a6   :  { %983 = vrot.lane.b32.xlu0 %v960_v14, %s1635_s11 }
 0x5a7   :  { %999 = vrot.lane.b32.xlu2 %v975_v15, %s1634_s10  ;;  %996 = vrot.lane.b32.xlu1 %v960_v14, %s1633_s2 }
 0x5f9   :  { %v979_v17 = vpop.permute.xlu2 %978 }
 0x5fa   :  { %v981_v23 = vsel %vm489_vm11, %v960_v14, %v979_v17 }
 0x601   :  { %v1000_v33 = vpop.permute.xlu2 %999 }
 0x610   :  { %v988_v16 = vpop.permute.xlu0 %987 }
 0x611   :  { %v991_v4 = vpop.permute.xlu1 %990 }
 0x612   :  { %v993_v2 = vsel %vm489_vm11, %v988_v16, %v991_v4 }
 0x613   :  { %v994_v5 = vmul.f32 2.0, %v993_v2 }
 0x615   :  { %v1483_v18 = vadd.f32 -1.0, %v994_v5 }
 0x617   :  { %v1004_v25 = vmul.f32 %v1483_v18, %v981_v23 }
 0x618   :  { %v984_v19 = vpop.permute.xlu0 %983 }
 0x619   :  { %v986_v24 = vsel %vm489_vm11, %v984_v19, %v975_v15  ;;  %v997_v29 = vpop.permute.xlu1 %996 }
 0x61a   :  { %v1003_v27 = vmul.f32 %v986_v24, %v1960_v32  ;;  %v1002_v38 = vsel %vm489_vm11, %v997_v29, %v1000_v33  ;;  %v303_v32 = vadd.f32 %v1970_v42, %v1846_v22 }
 0x61c   :  { %v1988_v28 = vadd.f32 %v1004_v25, %v1003_v27 }
 0x61e   :  { %1571 = vtanh.f32 %v1988_v28 }
 0x624   :  { %v1572_v36 = vpop.eup %1571 }
 0x625   :  { %v1992_v39 = vmul.f32 %v1572_v36, %v1002_v38 }
 0x627   :  { %v1027_v30 = vpack.c.bf16 %v1992_v39, %v1992_v39 }
 0x629   :  { %1484 = vmatmul.msk.bf16.vlgmr.msra.gmra.mxu2 %vm415_vm12, %v1027_v30  ;;  %1485 = vmatmul.msk.bf16.vlgmr.msra.gmra.mxu3 %vm415_vm12, %v1027_v30 }
 0x6ac   :  { %v1040_v47 = vpop.f32.mrf.mxu2  ;;  %v1053_v34 = vpop.f32.mrf.mxu3 }
 0x6ad   :  { %v1057_v51 = vadd.f32 %v1040_v47, %v303_v32  ;;  %v1058_v52 = vadd.f32 %v1053_v34, %v1851_v31 }
 0x6af   :  { %v1486_v53 = vmul.f32 -1.442695, %v1057_v51  ;;  %v1487_v20 = vmul.f32 -1.442695, %v1058_v52 }
 0x6b1   :  { %1573 = vpow2.f32 %v1486_v53 }
 0x6b2   :  { %1575 = vpow2.f32 %v1487_v20 }
 0x6b4   :  { %v1042_v41 = vpop.f32.mrf.mxu2  ;;  %v1055_v55 = vpop.f32.mrf.mxu3 }
 0x6b7   :  { %v1574_v40 = vpop.eup %1573 }
 0x6b8   :  { %v1576_v57 = vpop.eup %1575  ;;  %v1065_v44 = vadd.f32 1.0, %v1574_v40 }
 0x6b9   :  { %v1066_v58 = vadd.f32 1.0, %v1576_v57 }
 0x6ba   :  { %1577 = vrcp.f32 %v1065_v44  ;;  %v1078_v62 = vand.u32 2147483648, %v1065_v44  ;;  %v1076_v1 = vand.u32 2147483647, %v1065_v44  ;;  %vm1072_vm3 = vweird.f32 %v1065_v44 }
 0x6bb   :  { %1579 = vrcp.f32 %v1066_v58  ;;  %v1093_v31 = vand.u32 2147483648, %v1066_v58  ;;  %v1091_v37 = vand.u32 2147483647, %v1066_v58  ;;  %vm1087_vm4 = vweird.f32 %v1066_v58 }
 0x6bc   :  { %v1079_v59 = vor.u32 1.1754944e-38, %v1078_v62  ;;  %vm1077_vm7 = vcmp.eq.f32.partialorder %v1076_v1, 8.507059e+37 }
 0x6bd   :  { %v1094_v7 = vor.u32 1.1754944e-38, %v1093_v31  ;;  %vm1092_vm8 = vcmp.eq.f32.partialorder %v1091_v37, 8.507059e+37 }
 0x6c0   :  { %v1578_v0 = vpop.eup %1577 }
 0x6c1   :  { %v1580_v60 = vpop.eup %1579  ;;  %v1068_v42 = vmul.f32 %v1578_v0, %v1065_v44  ;;  %vm1073_vm1 = vweird.f32 %v1578_v0 }
 0x6c2   :  { %v1083_v54 = vmul.f32 %v1580_v60, %v1066_v58  ;;  %vm1088_vm2 = vweird.f32 %v1580_v60  ;;  %vm1074_vm5 = vmor %vm1072_vm3, %vm1073_vm1  ;;  %vm363_vm3 = vcmask 64512  }
 0x6c3   :  { %v1069_v10 = vsub.f32 1.0, %v1068_v42  ;;  %vm1089_vm6 = vmor %vm1087_vm4, %vm1088_vm2  ;;  %vm537_vm4 = vcmask 64568  }
 0x6c4   :  { %v1084_v61 = vsub.f32 1.0, %v1083_v54 }
 0x6c5   :  { %v1070_v63 = vmul.f32 %v1578_v0, %v1069_v10 }
 0x6c6   :  { %v1085_v3 = vmul.f32 %v1580_v60, %v1084_v61 }
 0x6c7   :  { %v1071_v6 = vadd.f32 %v1578_v0, %v1070_v63 }
 0x6c8   :  { %v1086_v46 = vadd.f32 %v1580_v60, %v1085_v3 }
 0x6c9   :  { %v1075_v8 = vsel %vm1074_vm5, %v1578_v0, %v1071_v6  ;;  %vm655_vm5 = vcmask 15368  }
 0x6ca   :  { %v1090_v9 = vsel %vm1089_vm6, %v1580_v60, %v1086_v46  ;;  %v1080_v56 = vsel %vm1077_vm7, %v1079_v59, %v1075_v8  ;;  %v1521_v8 = vld [vmem:[#allocation8] ss:$0 sm:$0xff] }
 0x6cb   :  { %v1095_v11 = vsel %vm1092_vm8, %v1094_v7, %v1090_v9  ;;  %1107 = vrot.lane.b32.xlu0 %v1080_v56, %s1634_s10  ;;  %v2033_v7 = vld [vmem:[%s2229_s3] ss:$0 sm:$0xff] }
 0x6cc   :  { %1098 = vrot.lane.b32.xlu2 %v1095_v11, %s1633_s2  ;;  %1110 = vrot.lane.b32.xlu1 %v1095_v11, %s1635_s11  ;;  %v520_v9 = vmul.f32 %v2033_v7, %v1874_v35 }
 0x6d3   :  { %1103 = vrot.lane.b32.xlu0 %v1080_v56, %s1635_s11 }
 0x6d4   :  { %1119 = vrot.lane.b32.xlu2 %v1095_v11, %s1634_s10  ;;  %1116 = vrot.lane.b32.xlu1 %v1080_v56, %s1633_s2 }
 0x726   :  { %v1099_v16 = vpop.permute.xlu2 %1098 }
 0x727   :  { %v1101_v5 = vsel %vm489_vm11, %v1080_v56, %v1099_v16  ;;  %v521_v56 = vsel %vm489_vm11, %v520_v9, 0.0 }
 0x72e   :  { %v1120_v25 = vpop.permute.xlu2 %1119 }
 0x73d   :  { %v1108_v12 = vpop.permute.xlu0 %1107 }
 0x73e   :  { %v1111_v13 = vpop.permute.xlu1 %1110 }
 0x73f   :  { %v1113_v14 = vsel %vm489_vm11, %v1108_v12, %v1111_v13  ;;  %v764_v13 = vmul.f32 %v2033_v7, %v1934_v49 }
 0x740   :  { %v1114_v15 = vmul.f32 2.0, %v1113_v14 }
 0x742   :  { %v1488_v4 = vadd.f32 -1.0, %v1114_v15 }
 0x744   :  { %v1124_v18 = vmul.f32 %v1488_v4, %v1101_v5  ;;  %v886_v4 = vmul.f32 %v2033_v7, %v1964_v45 }
 0x745   :  { %v1104_v2 = vpop.permute.xlu0 %1103 }
 0x746   :  { %v1106_v17 = vsel %vm489_vm11, %v1104_v2, %v1095_v11  ;;  %v1117_v24 = vpop.permute.xlu1 %1116  ;;  %v642_v11 = vmul.f32 %v2033_v7, %v1904_v43 }
 0x747   :  { %v1123_v19 = vmul.f32 %v1106_v17, %v1988_v28  ;;  %v1122_v29 = vsel %vm489_vm11, %v1117_v24, %v1120_v25  ;;  %v306_v28 = vadd.f32 %v1972_v48, %v1846_v22 }
 0x748   :  { %v643_v12 = vsel %vm489_vm11, %v642_v11, 0.0 }
 0x749   :  { %v2011_v23 = vadd.f32 %v1124_v18, %v1123_v19  ;;  %v887_v18 = vsel %vm489_vm11, %v886_v4, 0.0 }
 0x74b   :  { %1581 = vtanh.f32 %v2011_v23 }
 0x751   :  { %v1582_v27 = vpop.eup %1581 }
 0x752   :  { %v2015_v33 = vmul.f32 %v1582_v27, %v1122_v29 }
 0x754   :  { %v1147_v36 = vpack.c.bf16 %v2015_v33, %v2015_v33 }
 0x756   :  { %1489 = vmatmul.msk.bf16.vlgmr.msra.gmra.mxu0 %vm415_vm12, %v1147_v36  ;;  %1490 = vmatmul.msk.bf16.vlgmr.msra.gmra.mxu1 %vm415_vm12, %v1147_v36 }
 0x7d3   :  { %v1160_v38 = vpop.f32.mrf.mxu0  ;;  %v1173_v30 = vpop.f32.mrf.mxu1 }
 0x7d4   :  { %v1177_v32 = vadd.f32 %v1160_v38, %v306_v28  ;;  %v1178_v47 = vadd.f32 %v1173_v30, %v1849_v26 }
 0x7d6   :  { %v1491_v34 = vmul.f32 -1.442695, %v1177_v32  ;;  %v1492_v51 = vmul.f32 -1.442695, %v1178_v47 }
 0x7d8   :  { %1583 = vpow2.f32 %v1491_v34  ;;  %v2068_v34 = vmul.f32 %v2033_v7, %v2015_v33 }
 0x7d9   :  { %1585 = vpow2.f32 %v1492_v51 }
 0x7db   :  { %v1162_v52 = vpop.f32.mrf.mxu0  ;;  %v1175_v53 = vpop.f32.mrf.mxu1 }
 0x7de   :  { %v1584_v20 = vpop.eup %1583 }
 0x7df   :  { %v1586_v41 = vpop.eup %1585  ;;  %v1185_v55 = vadd.f32 1.0, %v1584_v20 }
 0x7e0   :  { %v1186_v40 = vadd.f32 1.0, %v1586_v41 }
 0x7e1   :  { %1587 = vrcp.f32 %v1185_v55  ;;  %v1198_v42 = vand.u32 2147483648, %v1185_v55  ;;  %v1196_v10 = vand.u32 2147483647, %v1185_v55  ;;  %vm1192_vm13 = vweird.f32 %v1185_v55 }
 0x7e2   :  { %1589 = vrcp.f32 %v1186_v40  ;;  %v1213_v26 = vand.u32 2147483648, %v1186_v40  ;;  %v1211_v62 = vand.u32 2147483647, %v1186_v40  ;;  %vm1207_vm14 = vweird.f32 %v1186_v40 }
 0x7e3   :  { %v1199_v1 = vor.u32 1.1754944e-38, %v1198_v42  ;;  %vm1197_vm1 = vcmp.eq.f32.partialorder %v1196_v10, 8.507059e+37  ;;  %v308_v42 = vadd.f32 %v1974_v50, %v1846_v22 }
 0x7e4   :  { %v1214_v3 = vor.u32 1.1754944e-38, %v1213_v26  ;;  %vm1212_vm2 = vcmp.eq.f32.partialorder %v1211_v62, 8.507059e+37 }
 0x7e7   :  { %v1588_v57 = vpop.eup %1587 }
 0x7e8   :  { %v1590_v44 = vpop.eup %1589  ;;  %v1188_v48 = vmul.f32 %v1588_v57, %v1185_v55  ;;  %vm1193_vm9 = vweird.f32 %v1588_v57  ;;  %v765_v55 = vsel %vm489_vm11, %v764_v13, 0.0 }
 0x7e9   :  { %v1203_v58 = vmul.f32 %v1590_v44, %v1186_v40  ;;  %vm1208_vm10 = vweird.f32 %v1590_v44  ;;  %vm1194_vm15 = vmor %vm1192_vm13, %vm1193_vm9 }
 0x7ea   :  { %v1189_v0 = vsub.f32 1.0, %v1188_v48  ;;  %vm1209_vm0 = vmor %vm1207_vm14, %vm1208_vm10 }
 0x7eb   :  { %v1204_v60 = vsub.f32 1.0, %v1203_v58 }
 0x7ec   :  { %v1190_v54 = vmul.f32 %v1588_v57, %v1189_v0 }
 0x7ed   :  { %v1205_v61 = vmul.f32 %v1590_v44, %v1204_v60 }
 0x7ee   :  { %v1191_v31 = vadd.f32 %v1588_v57, %v1190_v54 }
 0x7ef   :  { %v1206_v63 = vadd.f32 %v1590_v44, %v1205_v61 }
 0x7f0   :  { %v1195_v37 = vsel %vm1194_vm15, %v1588_v57, %v1191_v31 }
 0x7f1   :  { %v1210_v6 = vsel %vm1209_vm0, %v1590_v44, %v1206_v63  ;;  %v1200_v46 = vsel %vm1197_vm1, %v1199_v1, %v1195_v37  ;;  %vm659_vm0 = vcmask 56368   ;;  %vm777_vm1 = vcmask 23568  }
 0x7f2   :  { %v1215_v59 = vsel %vm1212_vm2, %v1214_v3, %v1210_v6  ;;  %1227 = vrot.lane.b32.xlu0 %v1200_v46, %s1634_s10  ;;  %vm781_vm2 = vcmask 48168  }
 0x7f3   :  { %1218 = vrot.lane.b32.xlu2 %v1215_v59, %s1633_s2  ;;  %1230 = vrot.lane.b32.xlu1 %v1215_v59, %s1635_s11 }
 0x7fa   :  { %1223 = vrot.lane.b32.xlu0 %v1200_v46, %s1635_s11 }
 0x7fb   :  { %1239 = vrot.lane.b32.xlu2 %v1215_v59, %s1634_s10  ;;  %1236 = vrot.lane.b32.xlu1 %v1200_v46, %s1633_s2 }
 0x802   :  { %360 = vperm.xlu0 %1520, %v1521_v8  }
 0x803   :  { %525 = vrot.lane.b32.xlu2 %v520_v9, %s1635_s11 }
 0x825   :  { %522 = vadd.xlane.f32.xlu1 %v521_v56 }
 0x82c   :  { %644 = vadd.xlane.f32.xlu0 %v643_v12 }
 0x83e   :  { %647 = vrot.lane.b32.xlu1 %v642_v11, %s1635_s11 }
 0x840   :  { %769 = vrot.lane.b32.xlu0 %v764_v13, %s1635_s11 }
 0x84d   :  { %v1219_v35 = vpop.permute.xlu2 %1218 }
 0x84e   :  { %v1221_v24 = vsel %vm489_vm11, %v1200_v46, %v1219_v35 }
 0x855   :  { %v1240_v14 = vpop.permute.xlu2 %1239 }
 0x85d   :  { %v526_v15 = vpop.permute.xlu2 %525 }
 0x85e   :  { %v528_v16 = vsel %vm489_vm11, %v526_v15, 0.0 }
 0x85f   :  { %529 = vadd.xlane.f32.xlu2 %v528_v16 }
 0x864   :  { %v1228_v43 = vpop.permute.xlu0 %1227 }
 0x865   :  { %v1231_v2 = vpop.permute.xlu1 %1230 }
 0x866   :  { %v1233_v5 = vsel %vm489_vm11, %v1228_v43, %v1231_v2 }
 0x867   :  { %v1234_v17 = vmul.f32 2.0, %v1233_v5 }
 0x868   :  { %888 = vadd.xlane.f32.xlu1 %v887_v18 }
 0x869   :  { %v1493_v49 = vadd.f32 -1.0, %v1234_v17 }
 0x86b   :  { %v1244_v27 = vmul.f32 %v1493_v49, %v1221_v24 }
 0x86c   :  { %v1224_v19 = vpop.permute.xlu0 %1223 }
 0x86d   :  { %v1226_v25 = vsel %vm489_vm11, %v1224_v19, %v1215_v59  ;;  %v1237_v28 = vpop.permute.xlu1 %1236 }
 0x86e   :  { %v1243_v29 = vmul.f32 %v1226_v25, %v2011_v23  ;;  %v1242_v30 = vsel %vm489_vm11, %v1237_v28, %v1240_v14  ;;  %v1008_v23 = vmul.f32 %v2033_v7, %v1992_v39 }
 0x870   :  { %v2054_v36 = vadd.f32 %v1244_v27, %v1243_v29  ;;  %v1009_v62 = vsel %vm489_vm11, %v1008_v23, 0.0 }
 0x872   :  { %1591 = vtanh.f32 %v2054_v36 }
 0x874   :  { %v361_v45 = vpop.permute.xlu0 %360 }
 0x875   :  { %364 = vst.msk [vmem:[%s2233_s7] sm:$0xff] %vm363_vm3, %v361_v45  ;;  %vm899_vm3 = vcmask 31768  }
 0x878   :  { %v1592_v38 = vpop.eup %1591 }
 0x879   :  { %v1247_v32 = vmul.f32 %v1592_v38, %v1242_v30 }
 0x87b   :  { %v1267_v47 = vpack.c.bf16 %v1247_v32, %v1247_v32  ;;  %v1248_v51 = vmul.f32 %v2033_v7, %v1247_v32 }
 0x87c   :  { %v531_v52 = vld [vmem:[%s2233_s7] sm:$0xff] }
 0x87d   :  { %1494 = vmatmul.msk.bf16.vlgmr.msrb.gmra.mxu2 %vm415_vm12, %v1267_v47  ;;  %1495 = vmatmul.msk.bf16.vlgmr.msrb.gmra.mxu3 %vm415_vm12, %v1267_v47  ;;  %vm533_vm12 = vcmask 7168   ;;  %v1249_v37 = vsel %vm489_vm11, %v1248_v51, 0.0 }
 0x881   :  { %1013 = vrot.lane.b32.xlu1 %v1008_v23, %s1635_s11 }
 0x889   :  { %1133 = vrot.lane.b32.xlu1 %v2068_v34, %s1635_s11 }
 0x891   :  { %1253 = vrot.lane.b32.xlu1 %v1248_v51, %s1635_s11 }
 0x898   :  { %v523_v53 = vpop.xlane.xlu1 %522 }
 0x899   :  { %v532_v39 = vadd.f32 %v531_v52, %v523_v53 }
 0x89b   :  { %534 = vst.msk [vmem:[%s2233_s7] sm:$0xff] %vm533_vm12, %v532_v39 }
 0x89f   :  { %v645_v41 = vpop.xlane.xlu0 %644 }
 0x8a2   :  { %v535_v48 = vld [vmem:[%s2233_s7] sm:$0xff] }
 0x8b0   :  { %v648_v33 = vpop.permute.xlu1 %647 }
 0x8b1   :  { %v650_v20 = vsel %vm489_vm11, %v648_v33, 0.0 }
 0x8b2   :  { %651 = vadd.xlane.f32.xlu2 %v650_v20  ;;  %v770_v40 = vpop.permute.xlu0 %769  ;;  %v1129_v20 = vsel %vm489_vm11, %v2068_v34, 0.0 }
 0x8b3   :  { %v772_v57 = vsel %vm489_vm11, %v770_v40, 0.0 }
 0x8ba   :  { %766 = vadd.xlane.f32.xlu2 %v765_v55 }
 0x8c2   :  { %773 = vadd.xlane.f32.xlu2 %v772_v57 }
 0x8d2   :  { %v530_v44 = vpop.xlane.xlu2 %529 }
 0x8d3   :  { %v536_v58 = vadd.f32 %v535_v48, %v530_v44 }
 0x8d5   :  { %538 = vst.msk [vmem:[%s2233_s7] sm:$0xff] %vm537_vm4, %v536_v58 }
 0x8da   :  { %891 = vrot.lane.b32.xlu2 %v886_v4, %s1635_s11 }
 0x8db   :  { %v889_v47 = vpop.xlane.xlu1 %888 }
 0x8dc   :  { %v653_v0 = vld [vmem:[%s2233_s7] sm:$0xff] }
 0x8dd   :  { %v654_v60 = vadd.f32 %v653_v0, %v645_v41 }
 0x8df   :  { %656 = vst.msk [vmem:[%s2233_s7] sm:$0xff] %vm655_vm5, %v654_v60 }
 0x8e6   :  { %v657_v24 = vld [vmem:[%s2233_s7] sm:$0xff] }
 0x8f3   :  { %v1014_v52 = vpop.permute.xlu1 %1013 }
 0x8f4   :  { %v1016_v33 = vsel %vm489_vm11, %v1014_v52, 0.0 }
 0x8fb   :  { %v1134_v41 = vpop.permute.xlu1 %1133 }
 0x8fc   :  { %v1136_v55 = vsel %vm489_vm11, %v1134_v41, 0.0 }
 0x900   :  { %v1280_v26 = vpop.f32.mrf.mxu2  ;;  %v1293_v54 = vpop.f32.mrf.mxu3 }
 0x901   :  { %v1297_v10 = vadd.f32 %v1280_v26, %v308_v42  ;;  %v1298_v61 = vadd.f32 %v1293_v54, %v1844_v21 }
 0x903   :  { %v1496_v31 = vmul.f32 -1.442695, %v1297_v10  ;;  %v1497_v63 = vmul.f32 -1.442695, %v1298_v61  ;;  %1010 = vadd.xlane.f32.xlu2 %v1009_v62  ;;  %v1254_v40 = vpop.permute.xlu1 %1253 }
 0x904   :  { %v1256_v57 = vsel %vm489_vm11, %v1254_v40, 0.0 }
 0x905   :  { %1593 = vpow2.f32 %v1496_v31 }
 0x906   :  { %1595 = vpow2.f32 %v1497_v63 }
 0x908   :  { %v1282_v1 = vpop.f32.mrf.mxu2  ;;  %v1295_v3 = vpop.f32.mrf.mxu3 }
 0x90b   :  { %v1594_v6 = vpop.eup %1593  ;;  %1250 = vadd.xlane.f32.xlu2 %v1249_v37 }
 0x90c   :  { %v1596_v46 = vpop.eup %1595  ;;  %v1305_v22 = vadd.f32 1.0, %v1594_v6 }
 0x90d   :  { %v1306_v50 = vadd.f32 1.0, %v1596_v46 }
 0x90e   :  { %1597 = vrcp.f32 %v1305_v22  ;;  %v1318_v11 = vand.u32 2147483648, %v1305_v22  ;;  %v1316_v35 = vand.u32 2147483647, %v1305_v22  ;;  %vm1312_vm7 = vweird.f32 %v1305_v22 }
 0x90f   :  { %1599 = vrcp.f32 %v1306_v50  ;;  %v1333_v43 = vand.u32 2147483648, %v1306_v50  ;;  %vm1327_vm13 = vweird.f32 %v1306_v50  ;;  %v1331_v5 = vand.u32 2147483647, %v1306_v50 }
 0x910   :  { %v1319_v16 = vor.u32 1.1754944e-38, %v1318_v11  ;;  %vm1317_vm10 = vcmp.eq.f32.partialorder %v1316_v35, 8.507059e+37 }
 0x911   :  { %v1334_v49 = vor.u32 1.1754944e-38, %v1333_v43  ;;  %vm1332_vm15 = vcmp.eq.f32.partialorder %v1331_v5, 8.507059e+37 }
 0x914   :  { %v1598_v59 = vpop.eup %1597 }
 0x915   :  { %v1600_v21 = vpop.eup %1599  ;;  %v1308_v8 = vmul.f32 %v1598_v59, %v1305_v22  ;;  %vm1313_vm6 = vweird.f32 %v1598_v59 }
 0x916   :  { %v1323_v9 = vmul.f32 %v1600_v21, %v1306_v50  ;;  %vm1328_vm8 = vweird.f32 %v1600_v21  ;;  %vm1314_vm9 = vmor %vm1312_vm7, %vm1313_vm6  ;;  %vm903_vm6 = vcmask 39968  }
 0x917   :  { %v1309_v56 = vsub.f32 1.0, %v1308_v8  ;;  %vm1329_vm14 = vmor %vm1327_vm13, %vm1328_vm8 }
 0x918   :  { %v1324_v12 = vsub.f32 1.0, %v1323_v9 }
 0x919   :  { %v1310_v13 = vmul.f32 %v1598_v59, %v1309_v56 }
 0x91a   :  { %v1325_v14 = vmul.f32 %v1600_v21, %v1324_v12 }
 0x91b   :  { %v1311_v15 = vadd.f32 %v1598_v59, %v1310_v13 }
 0x91c   :  { %v1326_v4 = vadd.f32 %v1600_v21, %v1325_v14 }
 0x91d   :  { %v1315_v2 = vsel %vm1314_vm9, %v1598_v59, %v1311_v15 }
 0x91e   :  { %v2104_v17 = vsel %vm1317_vm10, %v1319_v16, %v1315_v2  ;;  %v1330_v18 = vsel %vm1329_vm14, %v1600_v21, %v1326_v4 }
 0x91f   :  { %1347 = vrot.lane.b32.xlu1 %v2104_v17, %s1634_s10  ;;  %v2108_v19 = vsel %vm1332_vm15, %v1334_v49, %v1330_v18 }
 0x923   :  { %1338 = vrot.lane.b32.xlu2 %v2108_v19, %s1633_s2 }
 0x925   :  { %v652_v25 = vpop.xlane.xlu2 %651 }
 0x926   :  { %v658_v27 = vadd.f32 %v657_v24, %v652_v25 }
 0x927   :  { %1343 = vrot.lane.b32.xlu1 %v2104_v17, %s1635_s11 }
 0x928   :  { %660 = vst.msk [vmem:[%s2233_s7] sm:$0xff] %vm659_vm0, %v658_v27 }
 0x92b   :  { %1359 = vrot.lane.b32.xlu2 %v2108_v19, %s1634_s10 }
 0x92d   :  { %v767_v29 = vpop.xlane.xlu2 %766 }
 0x92f   :  { %v775_v45 = vld [vmem:[%s2233_s7] sm:$0xff]  ;;  %1356 = vrot.lane.b32.xlu1 %v2104_v17, %s1633_s2 }
 0x930   :  { %v776_v28 = vadd.f32 %v775_v45, %v767_v29 }
 0x932   :  { %778 = vst.msk [vmem:[%s2233_s7] sm:$0xff] %vm777_vm1, %v776_v28 }
 0x935   :  { %v774_v38 = vpop.xlane.xlu2 %773 }
 0x939   :  { %v779_v30 = vld [vmem:[%s2233_s7] sm:$0xff] }
 0x93a   :  { %v780_v32 = vadd.f32 %v779_v30, %v774_v38 }
 0x93c   :  { %782 = vst.msk [vmem:[%s2233_s7] sm:$0xff] %vm781_vm2, %v780_v32 }
 0x93d   :  { %v892_v23 = vpop.permute.xlu2 %891 }
 0x93e   :  { %v894_v51 = vsel %vm489_vm11, %v892_v23, 0.0 }
 0x93f   :  { %895 = vadd.xlane.f32.xlu0 %v894_v51 }
 0x943   :  { %v897_v53 = vld [vmem:[%s2233_s7] sm:$0xff] }
 0x944   :  { %v898_v39 = vadd.f32 %v897_v53, %v889_v47 }
 0x946   :  { %900 = vst.msk [vmem:[%s2233_s7] sm:$0xff] %vm899_vm3, %v898_v39 }
 0x947   :  { %1017 = vadd.xlane.f32.xlu0 %v1016_v33 }
 0x94d   :  { %v901_v48 = vld [vmem:[%s2233_s7] sm:$0xff] }
 0x94f   :  { %1130 = vadd.xlane.f32.xlu0 %v1129_v20 }
 0x957   :  { %1137 = vadd.xlane.f32.xlu0 %v1136_v55 }
 0x95f   :  { %1257 = vadd.xlane.f32.xlu0 %v1256_v57 }
 0x973   :  { %1350 = vrot.lane.b32.xlu0 %v2108_v19, %s1635_s11 }
 0x976   :  { %v1011_v34 = vpop.xlane.xlu2 %1010 }
 0x97e   :  { %v1251_v37 = vpop.xlane.xlu2 %1250 }
 0x986   :  { %v1339_v8 = vpop.permute.xlu2 %1338 }
 0x987   :  { %v1341_v12 = vsel %vm489_vm11, %v2104_v17, %v1339_v8 }
 0x98e   :  { %v1360_v43 = vpop.permute.xlu2 %1359 }
 0x991   :  { %v1348_v1 = vpop.permute.xlu1 %1347 }
 0x999   :  { %v1344_v22 = vpop.permute.xlu1 %1343 }
 0x99a   :  { %v1346_v56 = vsel %vm489_vm11, %v1344_v22, %v2108_v19 }
 0x99b   :  { %v1363_v13 = vmul.f32 %v1346_v56, %v2054_v36 }
 0x9a1   :  { %v1357_v4 = vpop.permute.xlu1 %1356 }
 0x9a2   :  { %v1362_v5 = vsel %vm489_vm11, %v1357_v4, %v1360_v43 }
 0x9b2   :  { %v896_v44 = vpop.xlane.xlu0 %895 }
 0x9b3   :  { %v902_v58 = vadd.f32 %v901_v48, %v896_v44 }
 0x9b5   :  { %904 = vst.msk [vmem:[%s2233_s7] sm:$0xff] %vm903_vm6, %v902_v58 }
 0x9ba   :  { %v1018_v42 = vpop.xlane.xlu0 %1017 }
 0x9bc   :  { %v1019_v0 = vld [vmem:[%s2233_s7] sm:$0xff] }
 0x9bd   :  { %v1020_v60 = vadd.f32 %v1019_v0, %v1011_v34 }
 0x9bf   :  { %1021 = vst.msk [vmem:[%s2233_s7] sm:$0xff] %vm903_vm6, %v1020_v60 }
 0x9c2   :  { %v1131_v10 = vpop.xlane.xlu0 %1130 }
 0x9c6   :  { %v1022_v26 = vld [vmem:[%s2233_s7] sm:$0xff] }
 0x9c7   :  { %v1023_v54 = vadd.f32 %v1022_v26, %v1018_v42 }
 0x9c9   :  { %1024 = vst.msk [vmem:[%s2233_s7] sm:$0xff] %vm899_vm3, %v1023_v54 }
 0x9ca   :  { %v1138_v31 = vpop.xlane.xlu0 %1137 }
 0x9d0   :  { %v1139_v61 = vld [vmem:[%s2233_s7] sm:$0xff] }
 0x9d1   :  { %v1140_v62 = vadd.f32 %v1139_v61, %v1131_v10 }
 0x9d2   :  { %v1258_v6 = vpop.xlane.xlu0 %1257 }
 0x9d3   :  { %1141 = vst.msk [vmem:[%s2233_s7] sm:$0xff] %vm781_vm2, %v1140_v62 }
 0x9da   :  { %v1142_v63 = vld [vmem:[%s2233_s7] sm:$0xff] }
 0x9db   :  { %v1143_v3 = vadd.f32 %v1142_v63, %v1138_v31 }
 0x9dd   :  { %1144 = vst.msk [vmem:[%s2233_s7] sm:$0xff] %vm777_vm1, %v1143_v3 }
 0x9e4   :  { %v1259_v46 = vld [vmem:[%s2233_s7] sm:$0xff] }
 0x9e5   :  { %v1260_v50 = vadd.f32 %v1259_v46, %v1251_v37  ;;  %v1351_v59 = vpop.permute.xlu0 %1350 }
 0x9e6   :  { %v1353_v21 = vsel %vm489_vm11, %v1348_v1, %v1351_v59 }
 0x9e7   :  { %1261 = vst.msk [vmem:[%s2233_s7] sm:$0xff] %vm659_vm0, %v1260_v50  ;;  %v1354_v9 = vmul.f32 2.0, %v1353_v21 }
 0x9e9   :  { %v1498_v11 = vadd.f32 -1.0, %v1354_v9 }
 0x9eb   :  { %v1364_v35 = vmul.f32 %v1498_v11, %v1341_v12 }
 0x9ed   :  { %v1365_v14 = vadd.f32 %v1364_v35, %v1363_v13 }
 0x9ee   :  { %v1262_v15 = vld [vmem:[%s2233_s7] sm:$0xff] }
 0x9ef   :  { %v1263_v16 = vadd.f32 %v1262_v15, %v1258_v6  ;;  %1601 = vtanh.f32 %v1365_v14 }
 0x9f1   :  { %1264 = vst.msk [vmem:[%s2233_s7] sm:$0xff] %vm655_vm5, %v1263_v16 }
 0x9f5   :  { %v1602_v2 = vpop.eup %1601 }
 0x9f6   :  { %v1367_v17 = vmul.f32 %v1602_v2, %v1362_v5 }
 0x9f8   :  { %v1368_v36 = vmul.f32 %v2033_v7, %v1367_v17  ;;  %v1379_v24 = vld [vmem:[%s2233_s7] sm:$0xff] }
 0x9fa   :  { %1373 = vrot.lane.b32.xlu1 %v1368_v36, %s1635_s11  ;;  %v1369_v18 = vsel %vm489_vm11, %v1368_v36, 0.0 }
 0x9fb   :  { %1370 = vadd.xlane.f32.xlu0 %v1369_v18 }
 0xa6c   :  { %v1374_v49 = vpop.permute.xlu1 %1373 }
 0xa6d   :  { %v1376_v19 = vsel %vm489_vm11, %v1374_v49, 0.0 }
 0xa6e   :  { %1377 = vadd.xlane.f32.xlu2 %v1376_v19  ;;  %v1371_v25 = vpop.xlane.xlu0 %1370 }
 0xa6f   :  { %v1380_v27 = vadd.f32 %v1379_v24, %v1371_v25 }
 0xa71   :  { %1381 = vst.msk [vmem:[%s2233_s7] sm:$0xff] %vm537_vm4, %v1380_v27 }
 0xa78   :  { %v1382_v29 = vld [vmem:[%s2233_s7] sm:$0xff] }
 0xae1   :  { %v1378_v7 = vpop.xlane.xlu2 %1377 }
 0xae2   :  { %v1383_v45 = vadd.f32 %v1382_v29, %v1378_v7 }
 0xae4   :  { %1384 = vst.msk [vmem:[%s2233_s7] sm:$0xff] %vm533_vm12, %v1383_v45 }
 0xae5   :  { %1389 = vsyncpa [#allocation10], 1 }

</bundles_post_ra>
